<compile_context>
chip_gen: v5e
topology: v5e:2x2
jax: 0.10.0
libtpu: 0.0.40
codegen_flags: <defaults>
</compile_context>

<pallas_src>
import math

import jax
import jax.numpy as jnp
from jax import lax
from jax.experimental import pallas as pl
from jax.experimental.pallas import tpu as pltpu

D = 32                    # per-branch hidden size
D3 = 3 * D                # 96 = node feature width
PAD = 128                 # lane-padded feature width
NG = 16                   # nodes per graph (demo)
NB = 2 * NG               # both graphs batched along sublanes
NUM_GNN_LAYERS = 3
LN_EPS = 1e-5

# Row layout of the packed "misc" parameter slab (MISC_ROWS, 128), f32.
ROW_BGNN = 0                              # 3 rows: merged GNN bias (bs|bf|ba)
ROW_LN_G = ROW_BGNN + NUM_GNN_LAYERS      # 3 rows: GNN LayerNorm gamma
ROW_LN_B = ROW_LN_G + NUM_GNN_LAYERS      # 3 rows: GNN LayerNorm beta
ROW_B0 = ROW_LN_B + NUM_GNN_LAYERS
ROW_G0 = ROW_B0 + 1
ROW_BE0 = ROW_G0 + 1
ROW_B1 = ROW_BE0 + 1
ROW_G1 = ROW_B1 + 1
ROW_BE1 = ROW_G1 + 1
ROW_W2A = ROW_BE1 + 1                     # w2[:D]  (multiplies layer-1 output)
ROW_W2B = ROW_W2A + 1                     # w2[D:]  (multiplies layer-0 output)
ROW_B2 = ROW_W2B + 1                      # scalar b2 stored at lane 0
MISC_ROWS = ROW_B2 + 1


def _gelu_exact(x):
    # PyTorch nn.GELU() default is the exact erf formulation.
    return 0.5 * x * (1.0 + lax.erf(x * (1.0 / math.sqrt(2.0))))


def _masked_layer_norm(x, gamma, beta, mask, true_width):
    # x is (rows, PAD) with lanes >= true_width identically zero; LayerNorm
    # statistics are taken over the real `true_width` features only.
    inv = 1.0 / float(true_width)
    mu = jnp.sum(x, axis=-1, keepdims=True) * inv          # padded lanes are 0
    d = jnp.where(mask, x - mu, 0.0)
    var = jnp.sum(d * d, axis=-1, keepdims=True) * inv
    # gamma/beta are zero beyond true_width, so padded lanes stay 0.
    return d * lax.rsqrt(var + LN_EPS) * gamma + beta


# ----------------------------------------------------------------------------
# Single fused kernel: both graph embeddings (batched) + dense head + softmax.
# ----------------------------------------------------------------------------
def comparator_kernel(ab_ref, w_gnn_ref, w0_ref, w1_ref, misc_ref, out_ref):
    lane = lax.broadcasted_iota(jnp.int32, (1, PAD), 1)
    mask_s = lane < D                       # Ws column block
    mask_f = (lane >= D) & (lane < 2 * D)   # Wf column block
    mask_g = (lane >= 2 * D) & (lane < D3)  # Wa column block
    mask96 = lane < D3
    mask32 = lane < D

    def ln_gnn(x, i):
        return _masked_layer_norm(
            x,
            misc_ref[ROW_LN_G + i:ROW_LN_G + i + 1, :],
            misc_ref[ROW_LN_B + i:ROW_LN_B + i + 1, :],
            mask96, D3)

    # Fused block-diagonal adjacency operand [A_bd | Bc_bd]  (NB, 2*NB).
    ab = ab_ref[...]
    ab_bf = ab.astype(jnp.bfloat16)                        # loop-invariant
    lane_ab = lax.broadcasted_iota(jnp.int32, (1, 2 * NB), 1)
    rsA = jnp.sum(jnp.where(lane_ab < NB, ab, 0.0), axis=-1, keepdims=True)
    rsB = jnp.sum(jnp.where(lane_ab >= NB, ab, 0.0), axis=-1, keepdims=True)

    # --- GNN layer 0: X == 0 -> the three linears collapse to their biases --
    #     Xc0 = [bs | rowsum(A)*bf | rowsum(Bc)*ba]   (column-packed layout)
    b_row0 = misc_ref[ROW_BGNN:ROW_BGNN + 1, :]
    mult = jnp.where(mask_s, 1.0,
                     jnp.where(mask_f, rsA,
                               jnp.where(mask_g, rsB, 0.0)))
    X = ln_gnn(_gelu_exact(b_row0 * mult), 0)              # (NB, PAD) f32

    # --- GNN layers 1..L-1: one merged X-side dot + one fused adjacency dot --
    for i in range(1, NUM_GNN_LAYERS):
        b_row = misc_ref[ROW_BGNN + i:ROW_BGNN + i + 1, :]
        P = jnp.dot(X.astype(jnp.bfloat16), w_gnn_ref[i - 1],
                    preferred_element_type=jnp.float32) + b_row
        # Recover F (Wf block) and G (Wa block); each carries its own bias.
        FG = jnp.concatenate([jnp.where(mask_f, P, 0.0),
                              jnp.where(mask_g, P, 0.0)],
                             axis=0).astype(jnp.bfloat16)  # (2*NB, PAD)
        Xc = jnp.where(mask_s, P, 0.0) + jnp.dot(
            ab_bf, FG, preferred_element_type=jnp.float32)
        X = ln_gnn(_gelu_exact(Xc), i)

    # --- Per-graph mean over nodes -> (2, PAD) embedding slab ----------------
    mean_a = jnp.mean(X[:NG, :], axis=0, keepdims=True)
    mean_b = jnp.mean(X[NG:, :], axis=0, keepdims=True)
    row2 = lax.broadcasted_iota(jnp.int32, (2, 1), 0)
    E = jnp.where(row2 == 0, mean_a, mean_b)               # (2, PAD)

    # --- Dense head (weights shared between the two graphs) ------------------
    H = jnp.dot(E.astype(jnp.bfloat16), w0_ref[...],
                preferred_element_type=jnp.float32) + misc_ref[ROW_B0:ROW_B0 + 1, :]
    H = _masked_layer_norm(jnp.maximum(H, 0.0),
                           misc_ref[ROW_G0:ROW_G0 + 1, :],
                           misc_ref[ROW_BE0:ROW_BE0 + 1, :], mask32, D)
    H0 = H                                                  # X_0 / Y_0
    H = jnp.dot(H.astype(jnp.bfloat16), w1_ref[...],
                preferred_element_type=jnp.float32) + misc_ref[ROW_B1:ROW_B1 + 1, :]
    H = _masked_layer_norm(jnp.maximum(H, 0.0),
                           misc_ref[ROW_G1:ROW_G1 + 1, :],
                           misc_ref[ROW_BE1:ROW_BE1 + 1, :], mask32, D)

    # --- Last dense layer: logit = cat(H, H0) @ w2 + b2 (w2 split in halves) -
    contrib = (H * misc_ref[ROW_W2A:ROW_W2A + 1, :]
               + H0 * misc_ref[ROW_W2B:ROW_W2B + 1, :])     # (2, PAD)
    lx = jnp.sum(contrib[0:1, :], axis=-1, keepdims=True)   # (1, 1) graph A
    ly = jnp.sum(contrib[1:2, :], axis=-1, keepdims=True)   # (1, 1) graph B
    # b2 row holds the scalar at lane 0 (rest zero) -> row-sum extracts it.
    b2 = jnp.sum(misc_ref[ROW_B2:ROW_B2 + 1, :], axis=-1, keepdims=True)
    lane2 = lax.broadcasted_iota(jnp.int32, (1, 2), 1)
    logits = jnp.where(lane2 == 0, lx, ly) + b2             # (1, 2)

    # Softmax over the two graph logits.
    z = logits - jnp.max(logits, axis=-1, keepdims=True)
    ez = jnp.exp(z)
    out_ref[...] = ez / jnp.sum(ez, axis=-1, keepdims=True)


# ----------------------------------------------------------------------------
# Parameters: deterministic synthetic init matching PyTorch defaults
# (Linear uniform(+-1/sqrt(fan_in)), LayerNorm gamma=1 / beta=0).
# ----------------------------------------------------------------------------
def init_params(key):
    def lin(k, fan_in, shape):
        bound = 1.0 / math.sqrt(fan_in)
        return jax.random.uniform(k, shape, jnp.float32, -bound, bound)

    keys = jax.random.split(key, 12)
    return {
        "wf": lin(keys[0], D3, (NUM_GNN_LAYERS, D3, D)),
        "bf": lin(keys[1], D3, (NUM_GNN_LAYERS, D)),
        "ws": lin(keys[2], D3, (NUM_GNN_LAYERS, D3, D)),
        "bs": lin(keys[3], D3, (NUM_GNN_LAYERS, D)),
        "wa": lin(keys[4], D3, (NUM_GNN_LAYERS, D3, D)),
        "ba": lin(keys[5], D3, (NUM_GNN_LAYERS, D)),
        "ln_g": jnp.ones((NUM_GNN_LAYERS, D3), jnp.float32),
        "ln_b": jnp.zeros((NUM_GNN_LAYERS, D3), jnp.float32),
        "w0": lin(keys[6], D3, (D3, D)),
        "b0": lin(keys[7], D3, (D,)),
        "w1": lin(keys[8], D, (D, D)),
        "b1": lin(keys[9], D, (D,)),
        "w2": lin(keys[10], 2 * D, (2 * D, 1)),
        "b2": lin(keys[11], 2 * D, (1,)),
        "g0": jnp.ones((D,), jnp.float32),
        "be0": jnp.zeros((D,), jnp.float32),
        "g1": jnp.ones((D,), jnp.float32),
        "be1": jnp.zeros((D,), jnp.float32),
    }


def pack_params(p):
    """Merge Ws/Wf/Wa into one column-packed (128,128) matrix per layer,
    zero-pad all feature axes to 128 lanes, and pack every tiny row parameter
    into one (MISC_ROWS, 128) slab. Big matrices are stored bf16."""
    L = NUM_GNN_LAYERS

    # Disjoint column blocks: s -> [0:D], f -> [D:2D], a -> [2D:3D].
    # Layer 0's weight is never used (X == 0), ship layers 1..L-1 only.
    w_gnn = jnp.zeros((L - 1, PAD, PAD), jnp.float32)
    w_gnn = w_gnn.at[:, :D3, 0:D].set(p["ws"][1:])
    w_gnn = w_gnn.at[:, :D3, D:2 * D].set(p["wf"][1:])
    w_gnn = w_gnn.at[:, :D3, 2 * D:D3].set(p["wa"][1:])

    w0 = jnp.zeros((PAD, PAD), jnp.float32).at[:D3, :D].set(p["w0"])
    w1 = jnp.zeros((PAD, PAD), jnp.float32).at[:D, :D].set(p["w1"])

    misc = jnp.zeros((MISC_ROWS, PAD), jnp.float32)
    misc = misc.at[ROW_BGNN:ROW_BGNN + L, 0:D].set(p["bs"])
    misc = misc.at[ROW_BGNN:ROW_BGNN + L, D:2 * D].set(p["bf"])
    misc = misc.at[ROW_BGNN:ROW_BGNN + L, 2 * D:D3].set(p["ba"])
    misc = misc.at[ROW_LN_G:ROW_LN_G + L, :D3].set(p["ln_g"])
    misc = misc.at[ROW_LN_B:ROW_LN_B + L, :D3].set(p["ln_b"])
    misc = misc.at[ROW_B0, :D].set(p["b0"])
    misc = misc.at[ROW_G0, :D].set(p["g0"])
    misc = misc.at[ROW_BE0, :D].set(p["be0"])
    misc = misc.at[ROW_B1, :D].set(p["b1"])
    misc = misc.at[ROW_G1, :D].set(p["g1"])
    misc = misc.at[ROW_BE1, :D].set(p["be1"])
    misc = misc.at[ROW_W2A, :D].set(p["w2"][:D, 0])
    misc = misc.at[ROW_W2B, :D].set(p["w2"][D:, 0])
    misc = misc.at[ROW_B2, 0].set(p["b2"][0])

    return {
        "w_gnn": w_gnn.astype(jnp.bfloat16),   # MXU-native; halves weight DMA
        "w0": w0.astype(jnp.bfloat16),
        "w1": w1.astype(jnp.bfloat16),
        "misc": misc,                          # f32 biases / LN params / w2 rows
    }


def _adjacency_operand(adj_a, adj_b):
    """Fused operand [blockdiag(A_a|diag=1, A_b|diag=1) | blockdiag(1-A_a, 1-A_b)].
    Complement is taken from the ORIGINAL adjacency (before the diagonal fill),
    matching the PyTorch reference; block-diagonal structure keeps the two
    graphs decoupled in the batched matmuls."""
    n = adj_a.shape[0]
    eye = jnp.eye(n, dtype=jnp.float32)
    a_f = jnp.where(eye > 0, 1.0, adj_a)       # A.fill_diagonal_(1)
    b_f = jnp.where(eye > 0, 1.0, adj_b)
    ca = 1.0 - adj_a                           # B = 1 - A (pre-fill values)
    cb = 1.0 - adj_b
    z = jnp.zeros((n, n), jnp.float32)
    a_bd = jnp.block([[a_f, z], [z, b_f]])
    c_bd = jnp.block([[ca, z], [z, cb]])
    return jnp.concatenate([a_bd, c_bd], axis=1).astype(jnp.float32)  # (2n, 4n)


def comparator_forward(packed, adj_a, adj_b):
    ab = _adjacency_operand(adj_a, adj_b)      # tiny XLA prep inside the jit
    return pl.pallas_call(
        comparator_kernel,
        out_shape=jax.ShapeDtypeStruct((1, 2), jnp.float32),
        in_specs=[pl.BlockSpec(memory_space=pltpu.MemorySpace.VMEM)] * 5,
        out_specs=pl.BlockSpec(memory_space=pltpu.MemorySpace.VMEM),
        cost_estimate=pl.CostEstimate(flops=3_400_000,
                                      transcendentals=13_000,
                                      bytes_accessed=150_000),
    )(ab, packed["w_gnn"], packed["w0"], packed["w1"], packed["misc"])


if __name__ == "__main__":
    key = jax.random.PRNGKey(0)
    kp, ka, kb = jax.random.split(key, 3)
    packed = pack_params(init_params(kp))      # packed once, outside the jit

    # Two small synthetic adjacency matrices (0/1, symmetric).
    a = jax.random.bernoulli(ka, 0.5, (NG, NG)).astype(jnp.float32)
    b = jax.random.bernoulli(kb, 0.5, (NG, NG)).astype(jnp.float32)
    A_in = jnp.maximum(a, a.T)
    B_in = jnp.maximum(b, b.T)

    out = jax.jit(comparator_forward)(packed, A_in, B_in)
    out = jax.block_until_ready(out)

    assert out.shape == (1, 2)
    assert bool(jnp.isfinite(out).all())
    assert abs(float(out.sum()) - 1.0) < 1e-5   # softmax sums to 1
    print("KERNEL_OK")
</pallas_src>

<mosaic_0001>
module attributes {stable_mosaic.version = 11 : i64} {
  func.func @comparator_kernel(%arg0: memref<32x64xf32, #tpu.memory_space<vmem>>, %arg1: memref<2x128x128xbf16, #tpu.memory_space<vmem>>, %arg2: memref<128x128xbf16, #tpu.memory_space<vmem>>, %arg3: memref<128x128xbf16, #tpu.memory_space<vmem>>, %arg4: memref<18x128xf32, #tpu.memory_space<vmem>>, %arg5: memref<1x2xf32, #tpu.memory_space<vmem>>) attributes {dimension_semantics = [], scalar_prefetch = 0 : i64, scratch_operands = 0 : i64, tpu.core_type = #tpu.core_type<tc>} {
    %0 = tpu.iota {dimensions = array<i32: 1>} : vector<1x128xi32>
    %c32_i32 = arith.constant 32 : i32
    %1 = vector.broadcast %c32_i32 : i32 to vector<1x128xi32>
    %2 = arith.cmpi slt, %0, %1 : vector<1x128xi32>
    %c32_i32_0 = arith.constant 32 : i32
    %3 = vector.broadcast %c32_i32_0 : i32 to vector<1x128xi32>
    %4 = arith.cmpi sge, %0, %3 : vector<1x128xi32>
    %c64_i32 = arith.constant 64 : i32
    %5 = vector.broadcast %c64_i32 : i32 to vector<1x128xi32>
    %6 = arith.cmpi slt, %0, %5 : vector<1x128xi32>
    %7 = arith.andi %4, %6 : vector<1x128xi1>
    %c64_i32_1 = arith.constant 64 : i32
    %8 = vector.broadcast %c64_i32_1 : i32 to vector<1x128xi32>
    %9 = arith.cmpi sge, %0, %8 : vector<1x128xi32>
    %c96_i32 = arith.constant 96 : i32
    %10 = vector.broadcast %c96_i32 : i32 to vector<1x128xi32>
    %11 = arith.cmpi slt, %0, %10 : vector<1x128xi32>
    %12 = arith.andi %9, %11 : vector<1x128xi1>
    %c96_i32_2 = arith.constant 96 : i32
    %13 = vector.broadcast %c96_i32_2 : i32 to vector<1x128xi32>
    %14 = arith.cmpi slt, %0, %13 : vector<1x128xi32>
    %c32_i32_3 = arith.constant 32 : i32
    %15 = vector.broadcast %c32_i32_3 : i32 to vector<1x128xi32>
    %16 = arith.cmpi slt, %0, %15 : vector<1x128xi32>
    %c0 = arith.constant 0 : index
    %c0_4 = arith.constant 0 : index
    %17 = vector.load %arg0[%c0, %c0_4] : memref<32x64xf32, #tpu.memory_space<vmem>>, vector<32x64xf32>
    %18 = arith.truncf %17 : vector<32x64xf32> to vector<32x64xbf16>
    %19 = tpu.iota {dimensions = array<i32: 1>} : vector<1x64xi32>
    %c32_i32_5 = arith.constant 32 : i32
    %20 = vector.broadcast %c32_i32_5 : i32 to vector<1x64xi32>
    %21 = arith.cmpi slt, %19, %20 : vector<1x64xi32>
    %cst = arith.constant 0.000000e+00 : f32
    %22 = vector.shape_cast %21 : vector<1x64xi1> to vector<1x64xi1>
    %23 = vector.broadcast %22 : vector<1x64xi1> to vector<32x64xi1>
    %24 = vector.broadcast %cst : f32 to vector<32x64xf32>
    %25 = arith.select %23, %17, %24 : vector<32x64xi1>, vector<32x64xf32>
    %cst_6 = arith.constant dense<0.000000e+00> : vector<32xf32>
    %26 = vector.multi_reduction <add>, %25, %cst_6 [1] : vector<32x64xf32> to vector<32xf32>
    %27 = vector.shape_cast %26 : vector<32xf32> to vector<32x1xf32>
    %c32_i32_7 = arith.constant 32 : i32
    %28 = vector.broadcast %c32_i32_7 : i32 to vector<1x64xi32>
    %29 = arith.cmpi sge, %19, %28 : vector<1x64xi32>
    %cst_8 = arith.constant 0.000000e+00 : f32
    %30 = vector.shape_cast %29 : vector<1x64xi1> to vector<1x64xi1>
    %31 = vector.broadcast %30 : vector<1x64xi1> to vector<32x64xi1>
    %32 = vector.broadcast %cst_8 : f32 to vector<32x64xf32>
    %33 = arith.select %31, %17, %32 : vector<32x64xi1>, vector<32x64xf32>
    %cst_9 = arith.constant dense<0.000000e+00> : vector<32xf32>
    %34 = vector.multi_reduction <add>, %33, %cst_9 [1] : vector<32x64xf32> to vector<32xf32>
    %35 = vector.shape_cast %34 : vector<32xf32> to vector<32x1xf32>
    %c0_10 = arith.constant 0 : index
    %c0_11 = arith.constant 0 : index
    %36 = vector.load %arg4[%c0_10, %c0_11] : memref<18x128xf32, #tpu.memory_space<vmem>>, vector<1x128xf32>
    %cst_12 = arith.constant 0.000000e+00 : f32
    %37 = vector.shape_cast %12 : vector<1x128xi1> to vector<1x128xi1>
    %38 = vector.broadcast %37 : vector<1x128xi1> to vector<32x128xi1>
    %39 = vector.shape_cast %35 : vector<32x1xf32> to vector<32x1xf32>
    %40 = vector.broadcast %39 : vector<32x1xf32> to vector<32x128xf32>
    %41 = vector.broadcast %cst_12 : f32 to vector<32x128xf32>
    %42 = arith.select %38, %40, %41 : vector<32x128xi1>, vector<32x128xf32>
    %43 = vector.shape_cast %7 : vector<1x128xi1> to vector<1x128xi1>
    %44 = vector.broadcast %43 : vector<1x128xi1> to vector<32x128xi1>
    %45 = vector.shape_cast %27 : vector<32x1xf32> to vector<32x1xf32>
    %46 = vector.broadcast %45 : vector<32x1xf32> to vector<32x128xf32>
    %47 = arith.select %44, %46, %42 : vector<32x128xi1>, vector<32x128xf32>
    %cst_13 = arith.constant 1.000000e+00 : f32
    %48 = vector.shape_cast %2 : vector<1x128xi1> to vector<1x128xi1>
    %49 = vector.broadcast %48 : vector<1x128xi1> to vector<32x128xi1>
    %50 = vector.broadcast %cst_13 : f32 to vector<32x128xf32>
    %51 = arith.select %49, %50, %47 : vector<32x128xi1>, vector<32x128xf32>
    %52 = vector.broadcast %36 : vector<1x128xf32> to vector<32x128xf32>
    %53 = arith.mulf %52, %51 : vector<32x128xf32>
    %cst_14 = arith.constant 5.000000e-01 : f32
    %54 = vector.broadcast %cst_14 : f32 to vector<32x128xf32>
    %55 = arith.mulf %54, %53 : vector<32x128xf32>
    %cst_15 = arith.constant 0.707106769 : f32
    %56 = vector.broadcast %cst_15 : f32 to vector<32x128xf32>
    %57 = arith.mulf %53, %56 : vector<32x128xf32>
    %58 = math.erf %57 : vector<32x128xf32>
    %cst_16 = arith.constant 1.000000e+00 : f32
    %59 = vector.broadcast %cst_16 : f32 to vector<32x128xf32>
    %60 = arith.addf %59, %58 : vector<32x128xf32>
    %61 = arith.mulf %55, %60 : vector<32x128xf32>
    %c3 = arith.constant 3 : index
    %c0_17 = arith.constant 0 : index
    %62 = vector.load %arg4[%c3, %c0_17] : memref<18x128xf32, #tpu.memory_space<vmem>>, vector<1x128xf32>
    %c6 = arith.constant 6 : index
    %c0_18 = arith.constant 0 : index
    %63 = vector.load %arg4[%c6, %c0_18] : memref<18x128xf32, #tpu.memory_space<vmem>>, vector<1x128xf32>
    %cst_19 = arith.constant dense<0.000000e+00> : vector<32xf32>
    %64 = vector.multi_reduction <add>, %61, %cst_19 [1] : vector<32x128xf32> to vector<32xf32>
    %65 = vector.shape_cast %64 : vector<32xf32> to vector<32x1xf32>
    %cst_20 = arith.constant 0.010416667 : f32
    %66 = vector.broadcast %cst_20 : f32 to vector<32x1xf32>
    %67 = arith.mulf %65, %66 : vector<32x1xf32>
    %68 = vector.broadcast %67 : vector<32x1xf32> to vector<32x128xf32>
    %69 = arith.subf %61, %68 : vector<32x128xf32>
    %cst_21 = arith.constant 0.000000e+00 : f32
    %70 = vector.shape_cast %14 : vector<1x128xi1> to vector<1x128xi1>
    %71 = vector.broadcast %70 : vector<1x128xi1> to vector<32x128xi1>
    %72 = vector.broadcast %cst_21 : f32 to vector<32x128xf32>
    %73 = arith.select %71, %69, %72 : vector<32x128xi1>, vector<32x128xf32>
    %74 = arith.mulf %73, %73 : vector<32x128xf32>
    %cst_22 = arith.constant dense<0.000000e+00> : vector<32xf32>
    %75 = vector.multi_reduction <add>, %74, %cst_22 [1] : vector<32x128xf32> to vector<32xf32>
    %76 = vector.shape_cast %75 : vector<32xf32> to vector<32x1xf32>
    %cst_23 = arith.constant 0.010416667 : f32
    %77 = vector.broadcast %cst_23 : f32 to vector<32x1xf32>
    %78 = arith.mulf %76, %77 : vector<32x1xf32>
    %cst_24 = arith.constant 9.99999974E-6 : f32
    %79 = vector.broadcast %cst_24 : f32 to vector<32x1xf32>
    %80 = arith.addf %78, %79 : vector<32x1xf32>
    %81 = math.rsqrt %80 : vector<32x1xf32>
    %82 = vector.broadcast %81 : vector<32x1xf32> to vector<32x128xf32>
    %83 = arith.mulf %73, %82 : vector<32x128xf32>
    %84 = vector.broadcast %62 : vector<1x128xf32> to vector<32x128xf32>
    %85 = arith.mulf %83, %84 : vector<32x128xf32>
    %86 = vector.broadcast %63 : vector<1x128xf32> to vector<32x128xf32>
    %87 = arith.addf %85, %86 : vector<32x128xf32>
    %c1 = arith.constant 1 : index
    %c0_25 = arith.constant 0 : index
    %88 = vector.load %arg4[%c1, %c0_25] : memref<18x128xf32, #tpu.memory_space<vmem>>, vector<1x128xf32>
    %89 = arith.truncf %87 : vector<32x128xf32> to vector<32x128xbf16>
    %c0_26 = arith.constant 0 : index
    %c0_27 = arith.constant 0 : index
    %c0_28 = arith.constant 0 : index
    %90 = vector.load %arg1[%c0_26, %c0_27, %c0_28] : memref<2x128x128xbf16, #tpu.memory_space<vmem>>, vector<1x128x128xbf16>
    %91 = vector.shape_cast %90 : vector<1x128x128xbf16> to vector<128x128xbf16>
    %cst_29 = arith.constant dense<0.000000e+00> : vector<32x128xf32>
    %92 = tpu.matmul %89, %91, %cst_29 {dimension_numbers = #tpu.dot_dimension_numbers<[1], [0], [0], [1], [0, 0, 1, 1], [], []>} : vector<32x128xbf16>, vector<128x128xbf16>, vector<32x128xf32> -> vector<32x128xf32>
    %93 = vector.broadcast %88 : vector<1x128xf32> to vector<32x128xf32>
    %94 = arith.addf %92, %93 : vector<32x128xf32>
    %cst_30 = arith.constant 0.000000e+00 : f32
    %95 = vector.shape_cast %7 : vector<1x128xi1> to vector<1x128xi1>
    %96 = vector.broadcast %95 : vector<1x128xi1> to vector<32x128xi1>
    %97 = vector.broadcast %cst_30 : f32 to vector<32x128xf32>
    %98 = arith.select %96, %94, %97 : vector<32x128xi1>, vector<32x128xf32>
    %cst_31 = arith.constant 0.000000e+00 : f32
    %99 = vector.shape_cast %12 : vector<1x128xi1> to vector<1x128xi1>
    %100 = vector.broadcast %99 : vector<1x128xi1> to vector<32x128xi1>
    %101 = vector.broadcast %cst_31 : f32 to vector<32x128xf32>
    %102 = arith.select %100, %94, %101 : vector<32x128xi1>, vector<32x128xf32>
    %103 = tpu.concatenate %98, %102 in 0 : vector<32x128xf32>, vector<32x128xf32> -> vector<64x128xf32>
    %104 = arith.truncf %103 : vector<64x128xf32> to vector<64x128xbf16>
    %cst_32 = arith.constant 0.000000e+00 : f32
    %105 = vector.shape_cast %2 : vector<1x128xi1> to vector<1x128xi1>
    %106 = vector.broadcast %105 : vector<1x128xi1> to vector<32x128xi1>
    %107 = vector.broadcast %cst_32 : f32 to vector<32x128xf32>
    %108 = arith.select %106, %94, %107 : vector<32x128xi1>, vector<32x128xf32>
    %cst_33 = arith.constant dense<0.000000e+00> : vector<32x128xf32>
    %109 = tpu.matmul %18, %104, %cst_33 {dimension_numbers = #tpu.dot_dimension_numbers<[1], [0], [0], [1], [0, 0, 1, 1], [], []>} : vector<32x64xbf16>, vector<64x128xbf16>, vector<32x128xf32> -> vector<32x128xf32>
    %110 = arith.addf %108, %109 : vector<32x128xf32>
    %cst_34 = arith.constant 5.000000e-01 : f32
    %111 = vector.broadcast %cst_34 : f32 to vector<32x128xf32>
    %112 = arith.mulf %111, %110 : vector<32x128xf32>
    %cst_35 = arith.constant 0.707106769 : f32
    %113 = vector.broadcast %cst_35 : f32 to vector<32x128xf32>
    %114 = arith.mulf %110, %113 : vector<32x128xf32>
    %115 = math.erf %114 : vector<32x128xf32>
    %cst_36 = arith.constant 1.000000e+00 : f32
    %116 = vector.broadcast %cst_36 : f32 to vector<32x128xf32>
    %117 = arith.addf %116, %115 : vector<32x128xf32>
    %118 = arith.mulf %112, %117 : vector<32x128xf32>
    %c4 = arith.constant 4 : index
    %c0_37 = arith.constant 0 : index
    %119 = vector.load %arg4[%c4, %c0_37] : memref<18x128xf32, #tpu.memory_space<vmem>>, vector<1x128xf32>
    %c7 = arith.constant 7 : index
    %c0_38 = arith.constant 0 : index
    %120 = vector.load %arg4[%c7, %c0_38] : memref<18x128xf32, #tpu.memory_space<vmem>>, vector<1x128xf32>
    %cst_39 = arith.constant dense<0.000000e+00> : vector<32xf32>
    %121 = vector.multi_reduction <add>, %118, %cst_39 [1] : vector<32x128xf32> to vector<32xf32>
    %122 = vector.shape_cast %121 : vector<32xf32> to vector<32x1xf32>
    %cst_40 = arith.constant 0.010416667 : f32
    %123 = vector.broadcast %cst_40 : f32 to vector<32x1xf32>
    %124 = arith.mulf %122, %123 : vector<32x1xf32>
    %125 = vector.broadcast %124 : vector<32x1xf32> to vector<32x128xf32>
    %126 = arith.subf %118, %125 : vector<32x128xf32>
    %cst_41 = arith.constant 0.000000e+00 : f32
    %127 = vector.shape_cast %14 : vector<1x128xi1> to vector<1x128xi1>
    %128 = vector.broadcast %127 : vector<1x128xi1> to vector<32x128xi1>
    %129 = vector.broadcast %cst_41 : f32 to vector<32x128xf32>
    %130 = arith.select %128, %126, %129 : vector<32x128xi1>, vector<32x128xf32>
    %131 = arith.mulf %130, %130 : vector<32x128xf32>
    %cst_42 = arith.constant dense<0.000000e+00> : vector<32xf32>
    %132 = vector.multi_reduction <add>, %131, %cst_42 [1] : vector<32x128xf32> to vector<32xf32>
    %133 = vector.shape_cast %132 : vector<32xf32> to vector<32x1xf32>
    %cst_43 = arith.constant 0.010416667 : f32
    %134 = vector.broadcast %cst_43 : f32 to vector<32x1xf32>
    %135 = arith.mulf %133, %134 : vector<32x1xf32>
    %cst_44 = arith.constant 9.99999974E-6 : f32
    %136 = vector.broadcast %cst_44 : f32 to vector<32x1xf32>
    %137 = arith.addf %135, %136 : vector<32x1xf32>
    %138 = math.rsqrt %137 : vector<32x1xf32>
    %139 = vector.broadcast %138 : vector<32x1xf32> to vector<32x128xf32>
    %140 = arith.mulf %130, %139 : vector<32x128xf32>
    %141 = vector.broadcast %119 : vector<1x128xf32> to vector<32x128xf32>
    %142 = arith.mulf %140, %141 : vector<32x128xf32>
    %143 = vector.broadcast %120 : vector<1x128xf32> to vector<32x128xf32>
    %144 = arith.addf %142, %143 : vector<32x128xf32>
    %c2 = arith.constant 2 : index
    %c0_45 = arith.constant 0 : index
    %145 = vector.load %arg4[%c2, %c0_45] : memref<18x128xf32, #tpu.memory_space<vmem>>, vector<1x128xf32>
    %146 = arith.truncf %144 : vector<32x128xf32> to vector<32x128xbf16>
    %c1_46 = arith.constant 1 : index
    %c0_47 = arith.constant 0 : index
    %c0_48 = arith.constant 0 : index
    %147 = vector.load %arg1[%c1_46, %c0_47, %c0_48] : memref<2x128x128xbf16, #tpu.memory_space<vmem>>, vector<1x128x128xbf16>
    %148 = vector.shape_cast %147 : vector<1x128x128xbf16> to vector<128x128xbf16>
    %cst_49 = arith.constant dense<0.000000e+00> : vector<32x128xf32>
    %149 = tpu.matmul %146, %148, %cst_49 {dimension_numbers = #tpu.dot_dimension_numbers<[1], [0], [0], [1], [0, 0, 1, 1], [], []>} : vector<32x128xbf16>, vector<128x128xbf16>, vector<32x128xf32> -> vector<32x128xf32>
    %150 = vector.broadcast %145 : vector<1x128xf32> to vector<32x128xf32>
    %151 = arith.addf %149, %150 : vector<32x128xf32>
    %cst_50 = arith.constant 0.000000e+00 : f32
    %152 = vector.shape_cast %7 : vector<1x128xi1> to vector<1x128xi1>
    %153 = vector.broadcast %152 : vector<1x128xi1> to vector<32x128xi1>
    %154 = vector.broadcast %cst_50 : f32 to vector<32x128xf32>
    %155 = arith.select %153, %151, %154 : vector<32x128xi1>, vector<32x128xf32>
    %cst_51 = arith.constant 0.000000e+00 : f32
    %156 = vector.shape_cast %12 : vector<1x128xi1> to vector<1x128xi1>
    %157 = vector.broadcast %156 : vector<1x128xi1> to vector<32x128xi1>
    %158 = vector.broadcast %cst_51 : f32 to vector<32x128xf32>
    %159 = arith.select %157, %151, %158 : vector<32x128xi1>, vector<32x128xf32>
    %160 = tpu.concatenate %155, %159 in 0 : vector<32x128xf32>, vector<32x128xf32> -> vector<64x128xf32>
    %161 = arith.truncf %160 : vector<64x128xf32> to vector<64x128xbf16>
    %cst_52 = arith.constant 0.000000e+00 : f32
    %162 = vector.shape_cast %2 : vector<1x128xi1> to vector<1x128xi1>
    %163 = vector.broadcast %162 : vector<1x128xi1> to vector<32x128xi1>
    %164 = vector.broadcast %cst_52 : f32 to vector<32x128xf32>
    %165 = arith.select %163, %151, %164 : vector<32x128xi1>, vector<32x128xf32>
    %cst_53 = arith.constant dense<0.000000e+00> : vector<32x128xf32>
    %166 = tpu.matmul %18, %161, %cst_53 {dimension_numbers = #tpu.dot_dimension_numbers<[1], [0], [0], [1], [0, 0, 1, 1], [], []>} : vector<32x64xbf16>, vector<64x128xbf16>, vector<32x128xf32> -> vector<32x128xf32>
    %167 = arith.addf %165, %166 : vector<32x128xf32>
    %cst_54 = arith.constant 5.000000e-01 : f32
    %168 = vector.broadcast %cst_54 : f32 to vector<32x128xf32>
    %169 = arith.mulf %168, %167 : vector<32x128xf32>
    %cst_55 = arith.constant 0.707106769 : f32
    %170 = vector.broadcast %cst_55 : f32 to vector<32x128xf32>
    %171 = arith.mulf %167, %170 : vector<32x128xf32>
    %172 = math.erf %171 : vector<32x128xf32>
    %cst_56 = arith.constant 1.000000e+00 : f32
    %173 = vector.broadcast %cst_56 : f32 to vector<32x128xf32>
    %174 = arith.addf %173, %172 : vector<32x128xf32>
    %175 = arith.mulf %169, %174 : vector<32x128xf32>
    %c5 = arith.constant 5 : index
    %c0_57 = arith.constant 0 : index
    %176 = vector.load %arg4[%c5, %c0_57] : memref<18x128xf32, #tpu.memory_space<vmem>>, vector<1x128xf32>
    %c8 = arith.constant 8 : index
    %c0_58 = arith.constant 0 : index
    %177 = vector.load %arg4[%c8, %c0_58] : memref<18x128xf32, #tpu.memory_space<vmem>>, vector<1x128xf32>
    %cst_59 = arith.constant dense<0.000000e+00> : vector<32xf32>
    %178 = vector.multi_reduction <add>, %175, %cst_59 [1] : vector<32x128xf32> to vector<32xf32>
    %179 = vector.shape_cast %178 : vector<32xf32> to vector<32x1xf32>
    %cst_60 = arith.constant 0.010416667 : f32
    %180 = vector.broadcast %cst_60 : f32 to vector<32x1xf32>
    %181 = arith.mulf %179, %180 : vector<32x1xf32>
    %182 = vector.broadcast %181 : vector<32x1xf32> to vector<32x128xf32>
    %183 = arith.subf %175, %182 : vector<32x128xf32>
    %cst_61 = arith.constant 0.000000e+00 : f32
    %184 = vector.shape_cast %14 : vector<1x128xi1> to vector<1x128xi1>
    %185 = vector.broadcast %184 : vector<1x128xi1> to vector<32x128xi1>
    %186 = vector.broadcast %cst_61 : f32 to vector<32x128xf32>
    %187 = arith.select %185, %183, %186 : vector<32x128xi1>, vector<32x128xf32>
    %188 = arith.mulf %187, %187 : vector<32x128xf32>
    %cst_62 = arith.constant dense<0.000000e+00> : vector<32xf32>
    %189 = vector.multi_reduction <add>, %188, %cst_62 [1] : vector<32x128xf32> to vector<32xf32>
    %190 = vector.shape_cast %189 : vector<32xf32> to vector<32x1xf32>
    %cst_63 = arith.constant 0.010416667 : f32
    %191 = vector.broadcast %cst_63 : f32 to vector<32x1xf32>
    %192 = arith.mulf %190, %191 : vector<32x1xf32>
    %cst_64 = arith.constant 9.99999974E-6 : f32
    %193 = vector.broadcast %cst_64 : f32 to vector<32x1xf32>
    %194 = arith.addf %192, %193 : vector<32x1xf32>
    %195 = math.rsqrt %194 : vector<32x1xf32>
    %196 = vector.broadcast %195 : vector<32x1xf32> to vector<32x128xf32>
    %197 = arith.mulf %187, %196 : vector<32x128xf32>
    %198 = vector.broadcast %176 : vector<1x128xf32> to vector<32x128xf32>
    %199 = arith.mulf %197, %198 : vector<32x128xf32>
    %200 = vector.broadcast %177 : vector<1x128xf32> to vector<32x128xf32>
    %201 = arith.addf %199, %200 : vector<32x128xf32>
    %202 = vector.extract_strided_slice %201 {offsets = [0, 0], sizes = [16, 128], strides = [1, 1]} : vector<32x128xf32> to vector<16x128xf32>
    %cst_65 = arith.constant dense<0.000000e+00> : vector<128xf32>
    %203 = vector.multi_reduction <add>, %202, %cst_65 [0] : vector<16x128xf32> to vector<128xf32>
    %204 = vector.shape_cast %203 : vector<128xf32> to vector<1x128xf32>
    %cst_66 = arith.constant 1.600000e+01 : f32
    %205 = vector.broadcast %cst_66 : f32 to vector<1x128xf32>
    %206 = arith.divf %204, %205 : vector<1x128xf32>
    %207 = vector.extract_strided_slice %201 {offsets = [16, 0], sizes = [16, 128], strides = [1, 1]} : vector<32x128xf32> to vector<16x128xf32>
    %cst_67 = arith.constant dense<0.000000e+00> : vector<128xf32>
    %208 = vector.multi_reduction <add>, %207, %cst_67 [0] : vector<16x128xf32> to vector<128xf32>
    %209 = vector.shape_cast %208 : vector<128xf32> to vector<1x128xf32>
    %cst_68 = arith.constant 1.600000e+01 : f32
    %210 = vector.broadcast %cst_68 : f32 to vector<1x128xf32>
    %211 = arith.divf %209, %210 : vector<1x128xf32>
    %212 = tpu.iota {dimensions = array<i32: 0>} : vector<2x1xi32>
    %c0_i32 = arith.constant 0 : i32
    %213 = vector.broadcast %c0_i32 : i32 to vector<2x1xi32>
    %214 = arith.cmpi eq, %212, %213 : vector<2x1xi32>
    %215 = vector.shape_cast %214 : vector<2x1xi1> to vector<2x1xi1>
    %216 = vector.broadcast %215 : vector<2x1xi1> to vector<2x128xi1>
    %217 = vector.shape_cast %206 : vector<1x128xf32> to vector<1x128xf32>
    %218 = vector.broadcast %217 : vector<1x128xf32> to vector<2x128xf32>
    %219 = vector.shape_cast %211 : vector<1x128xf32> to vector<1x128xf32>
    %220 = vector.broadcast %219 : vector<1x128xf32> to vector<2x128xf32>
    %221 = arith.select %216, %218, %220 : vector<2x128xi1>, vector<2x128xf32>
    %222 = arith.truncf %221 : vector<2x128xf32> to vector<2x128xbf16>
    %c0_69 = arith.constant 0 : index
    %c0_70 = arith.constant 0 : index
    %223 = vector.load %arg2[%c0_69, %c0_70] : memref<128x128xbf16, #tpu.memory_space<vmem>>, vector<128x128xbf16>
    %cst_71 = arith.constant dense<0.000000e+00> : vector<2x128xf32>
    %224 = tpu.matmul %222, %223, %cst_71 {dimension_numbers = #tpu.dot_dimension_numbers<[1], [0], [0], [1], [0, 0, 1, 1], [], []>} : vector<2x128xbf16>, vector<128x128xbf16>, vector<2x128xf32> -> vector<2x128xf32>
    %c9 = arith.constant 9 : index
    %c0_72 = arith.constant 0 : index
    %225 = vector.load %arg4[%c9, %c0_72] : memref<18x128xf32, #tpu.memory_space<vmem>>, vector<1x128xf32>
    %226 = vector.broadcast %225 : vector<1x128xf32> to vector<2x128xf32>
    %227 = arith.addf %224, %226 : vector<2x128xf32>
    %cst_73 = arith.constant 0.000000e+00 : f32
    %228 = vector.broadcast %cst_73 : f32 to vector<2x128xf32>
    %229 = arith.maximumf %227, %228 : vector<2x128xf32>
    %c10 = arith.constant 10 : index
    %c0_74 = arith.constant 0 : index
    %230 = vector.load %arg4[%c10, %c0_74] : memref<18x128xf32, #tpu.memory_space<vmem>>, vector<1x128xf32>
    %c11 = arith.constant 11 : index
    %c0_75 = arith.constant 0 : index
    %231 = vector.load %arg4[%c11, %c0_75] : memref<18x128xf32, #tpu.memory_space<vmem>>, vector<1x128xf32>
    %cst_76 = arith.constant dense<0.000000e+00> : vector<2xf32>
    %232 = vector.multi_reduction <add>, %229, %cst_76 [1] : vector<2x128xf32> to vector<2xf32>
    %233 = vector.shape_cast %232 : vector<2xf32> to vector<2x1xf32>
    %cst_77 = arith.constant 3.125000e-02 : f32
    %234 = vector.broadcast %cst_77 : f32 to vector<2x1xf32>
    %235 = arith.mulf %233, %234 : vector<2x1xf32>
    %236 = vector.broadcast %235 : vector<2x1xf32> to vector<2x128xf32>
    %237 = arith.subf %229, %236 : vector<2x128xf32>
    %cst_78 = arith.constant 0.000000e+00 : f32
    %238 = vector.shape_cast %16 : vector<1x128xi1> to vector<1x128xi1>
    %239 = vector.broadcast %238 : vector<1x128xi1> to vector<2x128xi1>
    %240 = vector.broadcast %cst_78 : f32 to vector<2x128xf32>
    %241 = arith.select %239, %237, %240 : vector<2x128xi1>, vector<2x128xf32>
    %242 = arith.mulf %241, %241 : vector<2x128xf32>
    %cst_79 = arith.constant dense<0.000000e+00> : vector<2xf32>
    %243 = vector.multi_reduction <add>, %242, %cst_79 [1] : vector<2x128xf32> to vector<2xf32>
    %244 = vector.shape_cast %243 : vector<2xf32> to vector<2x1xf32>
    %cst_80 = arith.constant 3.125000e-02 : f32
    %245 = vector.broadcast %cst_80 : f32 to vector<2x1xf32>
    %246 = arith.mulf %244, %245 : vector<2x1xf32>
    %cst_81 = arith.constant 9.99999974E-6 : f32
    %247 = vector.broadcast %cst_81 : f32 to vector<2x1xf32>
    %248 = arith.addf %246, %247 : vector<2x1xf32>
    %249 = math.rsqrt %248 : vector<2x1xf32>
    %250 = vector.broadcast %249 : vector<2x1xf32> to vector<2x128xf32>
    %251 = arith.mulf %241, %250 : vector<2x128xf32>
    %252 = vector.broadcast %230 : vector<1x128xf32> to vector<2x128xf32>
    %253 = arith.mulf %251, %252 : vector<2x128xf32>
    %254 = vector.broadcast %231 : vector<1x128xf32> to vector<2x128xf32>
    %255 = arith.addf %253, %254 : vector<2x128xf32>
    %256 = arith.truncf %255 : vector<2x128xf32> to vector<2x128xbf16>
    %c0_82 = arith.constant 0 : index
    %c0_83 = arith.constant 0 : index
    %257 = vector.load %arg3[%c0_82, %c0_83] : memref<128x128xbf16, #tpu.memory_space<vmem>>, vector<128x128xbf16>
    %cst_84 = arith.constant dense<0.000000e+00> : vector<2x128xf32>
    %258 = tpu.matmul %256, %257, %cst_84 {dimension_numbers = #tpu.dot_dimension_numbers<[1], [0], [0], [1], [0, 0, 1, 1], [], []>} : vector<2x128xbf16>, vector<128x128xbf16>, vector<2x128xf32> -> vector<2x128xf32>
    %c12 = arith.constant 12 : index
    %c0_85 = arith.constant 0 : index
    %259 = vector.load %arg4[%c12, %c0_85] : memref<18x128xf32, #tpu.memory_space<vmem>>, vector<1x128xf32>
    %260 = vector.broadcast %259 : vector<1x128xf32> to vector<2x128xf32>
    %261 = arith.addf %258, %260 : vector<2x128xf32>
    %cst_86 = arith.constant 0.000000e+00 : f32
    %262 = vector.broadcast %cst_86 : f32 to vector<2x128xf32>
    %263 = arith.maximumf %261, %262 : vector<2x128xf32>
    %c13 = arith.constant 13 : index
    %c0_87 = arith.constant 0 : index
    %264 = vector.load %arg4[%c13, %c0_87] : memref<18x128xf32, #tpu.memory_space<vmem>>, vector<1x128xf32>
    %c14 = arith.constant 14 : index
    %c0_88 = arith.constant 0 : index
    %265 = vector.load %arg4[%c14, %c0_88] : memref<18x128xf32, #tpu.memory_space<vmem>>, vector<1x128xf32>
    %cst_89 = arith.constant dense<0.000000e+00> : vector<2xf32>
    %266 = vector.multi_reduction <add>, %263, %cst_89 [1] : vector<2x128xf32> to vector<2xf32>
    %267 = vector.shape_cast %266 : vector<2xf32> to vector<2x1xf32>
    %cst_90 = arith.constant 3.125000e-02 : f32
    %268 = vector.broadcast %cst_90 : f32 to vector<2x1xf32>
    %269 = arith.mulf %267, %268 : vector<2x1xf32>
    %270 = vector.broadcast %269 : vector<2x1xf32> to vector<2x128xf32>
    %271 = arith.subf %263, %270 : vector<2x128xf32>
    %cst_91 = arith.constant 0.000000e+00 : f32
    %272 = vector.shape_cast %16 : vector<1x128xi1> to vector<1x128xi1>
    %273 = vector.broadcast %272 : vector<1x128xi1> to vector<2x128xi1>
    %274 = vector.broadcast %cst_91 : f32 to vector<2x128xf32>
    %275 = arith.select %273, %271, %274 : vector<2x128xi1>, vector<2x128xf32>
    %276 = arith.mulf %275, %275 : vector<2x128xf32>
    %cst_92 = arith.constant dense<0.000000e+00> : vector<2xf32>
    %277 = vector.multi_reduction <add>, %276, %cst_92 [1] : vector<2x128xf32> to vector<2xf32>
    %278 = vector.shape_cast %277 : vector<2xf32> to vector<2x1xf32>
    %cst_93 = arith.constant 3.125000e-02 : f32
    %279 = vector.broadcast %cst_93 : f32 to vector<2x1xf32>
    %280 = arith.mulf %278, %279 : vector<2x1xf32>
    %cst_94 = arith.constant 9.99999974E-6 : f32
    %281 = vector.broadcast %cst_94 : f32 to vector<2x1xf32>
    %282 = arith.addf %280, %281 : vector<2x1xf32>
    %283 = math.rsqrt %282 : vector<2x1xf32>
    %284 = vector.broadcast %283 : vector<2x1xf32> to vector<2x128xf32>
    %285 = arith.mulf %275, %284 : vector<2x128xf32>
    %286 = vector.broadcast %264 : vector<1x128xf32> to vector<2x128xf32>
    %287 = arith.mulf %285, %286 : vector<2x128xf32>
    %288 = vector.broadcast %265 : vector<1x128xf32> to vector<2x128xf32>
    %289 = arith.addf %287, %288 : vector<2x128xf32>
    %c15 = arith.constant 15 : index
    %c0_95 = arith.constant 0 : index
    %290 = vector.load %arg4[%c15, %c0_95] : memref<18x128xf32, #tpu.memory_space<vmem>>, vector<1x128xf32>
    %291 = vector.broadcast %290 : vector<1x128xf32> to vector<2x128xf32>
    %292 = arith.mulf %289, %291 : vector<2x128xf32>
    %c16 = arith.constant 16 : index
    %c0_96 = arith.constant 0 : index
    %293 = vector.load %arg4[%c16, %c0_96] : memref<18x128xf32, #tpu.memory_space<vmem>>, vector<1x128xf32>
    %294 = vector.broadcast %293 : vector<1x128xf32> to vector<2x128xf32>
    %295 = arith.mulf %255, %294 : vector<2x128xf32>
    %296 = arith.addf %292, %295 : vector<2x128xf32>
    %297 = vector.extract_strided_slice %296 {offsets = [0, 0], sizes = [1, 128], strides = [1, 1]} : vector<2x128xf32> to vector<1x128xf32>
    %cst_97 = arith.constant dense<0.000000e+00> : vector<1xf32>
    %298 = vector.multi_reduction <add>, %297, %cst_97 [1] : vector<1x128xf32> to vector<1xf32>
    %299 = vector.shape_cast %298 : vector<1xf32> to vector<1x1xf32>
    %300 = vector.extract_strided_slice %296 {offsets = [1, 0], sizes = [1, 128], strides = [1, 1]} : vector<2x128xf32> to vector<1x128xf32>
    %cst_98 = arith.constant dense<0.000000e+00> : vector<1xf32>
    %301 = vector.multi_reduction <add>, %300, %cst_98 [1] : vector<1x128xf32> to vector<1xf32>
    %302 = vector.shape_cast %301 : vector<1xf32> to vector<1x1xf32>
    %c17 = arith.constant 17 : index
    %c0_99 = arith.constant 0 : index
    %303 = vector.load %arg4[%c17, %c0_99] : memref<18x128xf32, #tpu.memory_space<vmem>>, vector<1x128xf32>
    %cst_100 = arith.constant dense<0.000000e+00> : vector<1xf32>
    %304 = vector.multi_reduction <add>, %303, %cst_100 [1] : vector<1x128xf32> to vector<1xf32>
    %305 = vector.shape_cast %304 : vector<1xf32> to vector<1x1xf32>
    %306 = tpu.iota {dimensions = array<i32: 1>} : vector<1x2xi32>
    %c0_i32_101 = arith.constant 0 : i32
    %307 = vector.broadcast %c0_i32_101 : i32 to vector<1x2xi32>
    %308 = arith.cmpi eq, %306, %307 : vector<1x2xi32>
    %309 = vector.shape_cast %299 : vector<1x1xf32> to vector<1x1xf32>
    %310 = vector.broadcast %309 : vector<1x1xf32> to vector<1x2xf32>
    %311 = vector.shape_cast %302 : vector<1x1xf32> to vector<1x1xf32>
    %312 = vector.broadcast %311 : vector<1x1xf32> to vector<1x2xf32>
    %313 = arith.select %308, %310, %312 : vector<1x2xi1>, vector<1x2xf32>
    %314 = vector.broadcast %305 : vector<1x1xf32> to vector<1x2xf32>
    %315 = arith.addf %313, %314 : vector<1x2xf32>
    %cst_102 = arith.constant dense<0xFF800000> : vector<1xf32>
    %316 = vector.multi_reduction <maximumf>, %315, %cst_102 [1] : vector<1x2xf32> to vector<1xf32>
    %317 = vector.shape_cast %316 : vector<1xf32> to vector<1x1xf32>
    %318 = vector.broadcast %317 : vector<1x1xf32> to vector<1x2xf32>
    %319 = arith.subf %315, %318 : vector<1x2xf32>
    %320 = math.exp %319 : vector<1x2xf32>
    %cst_103 = arith.constant dense<0.000000e+00> : vector<1xf32>
    %321 = vector.multi_reduction <add>, %320, %cst_103 [1] : vector<1x2xf32> to vector<1xf32>
    %322 = vector.shape_cast %321 : vector<1xf32> to vector<1x1xf32>
    %323 = vector.broadcast %322 : vector<1x1xf32> to vector<1x2xf32>
    %324 = arith.divf %320, %323 : vector<1x2xf32>
    %c0_104 = arith.constant 0 : index
    %c0_105 = arith.constant 0 : index
    %325 = vector.load %arg5[%c0_104, %c0_105] : memref<1x2xf32, #tpu.memory_space<vmem>>, vector<1x2xf32>
    tpu.vector_store %arg5[%c0_104, %c0_105], %324 {strides = array<i32>} : memref<1x2xf32, #tpu.memory_space<vmem>>, vector<1x2xf32>,
    return
  }
}

</mosaic_0001>

<bundles_post_ra>
// kernel: comparator_forward.1
= control target key start
LH: loop header
LB: loop body
LE: loop exit
PB: predicated region body
PF: predicated region fallthrough
CT: control target
= control target key end

     0   :  { %10 = vsyncpa [#allocation3], 0  ;;  %s2513_s0 = inlined_call_operand.vmem [shape: f32[32,64], index: 0, kind: input, shape index: {}]   ;;  %s2514_s1 = inlined_call_operand.vmem [shape: bf16[2,128,128], index: 1, kind: input, shape index: {}]   ;;  %s2515_s2 = inlined_call_operand.vmem [shape: bf16[128,128], index: 2, kind: input, shape index: {}]   ;;  %s2516_s3 = inlined_call_operand.hbm [shape: bf16[128,128], index: 3, kind: input, shape index: {}]   ;;  %s2517_s4 = inlined_call_operand.hbm [shape: f32[18,128], index: 4, kind: input, shape index: {}]   ;;  %s2518_s5 = inlined_call_operand.hbm [shape: f32[1,2], index: 5, kind: output, shape index: {}]  }
   0x1   :  { %11 = vsyncpa [#allocation6], 0 }
   0x2   :  { %12 = vsyncpa [#allocation4], 0  ;;  %s23_s20 = sshll.u32 %s2516_s3, 4  ;;  %s1901_s21 = smov [#allocation2]   ;;  %s24_s20 = int_to_ptr.hbm [resolvable:$true] %s23_s20 }
   0x3   :  { %s25_s22 = sshll.u32 %s1901_s21, 4  ;;  %s36_s25 = sshll.u32 %s2517_s4, 4  ;;  %s26_s22 = int_to_ptr.vmem [resolvable:$true] %s25_s22  ;;  %s37_s25 = int_to_ptr.hbm [resolvable:$true] %s36_s25 }
   0x4   :  { %s1902_s26 = smov 64   ;;  %s1903_s27 = smov 4  }
   0x5   :  { %31 = dma.hbm_to_vmem [thread:$0]  %s24_s20, 1024, %s26_s22, [#allocation3], %s1902_s26, %s1902_s26, %s1903_s27  }
   0x6   :  { %s1904_s28 = smov [#allocation5]   ;;  %s1905_s30 = smov 128  }
   0x7   :  { %s38_s29 = sshll.u32 %s1904_s28, 4  ;;  %s1906_s6 = smov 8   ;;  %s39_s29 = int_to_ptr.vmem [resolvable:$true] %s38_s29 }
   0x8   :  { %44 = dma.hbm_to_vmem [thread:$0]  %s37_s25, 384, %s39_s29, [#allocation6], %s1905_s30, %s1905_s30, %s1906_s6  }
   0x9   :  { %1895 = dma.done.wait [#allocation3], 1024  }
   0xa   :  { %1896 = vsyncadd [#allocation3], 4294966272 }
   0xb   :  { %1897 = dma.done.wait [#allocation6], 384  }
   0xc   :  { %1898 = vsyncadd [#allocation6], 4294966912  ;;  %v54_v0 = vlaneseq  ;;  %vm75_vm2 = vcmask 523264   ;;  %v1953_v2 = vld [vmem:[%s2513_s0] sm:$0xff]  ;;  %v1958_v3 = vld [vmem:[%s2513_s0 + $0x10] sm:$0xff]  ;;  %s1513_s7 = sshll.u32 %s2518_s5, 4  ;;  %s1514_s7 = int_to_ptr.hbm [resolvable:$true] %s1513_s7 }
   0xd   :  { %v1963_v4 = vld [vmem:[%s2513_s0 + $0x8] sm:$0xff]  ;;  %v1980_v9 = vld [vmem:[%s2513_s0 + $0x18] sm:$0xff]  ;;  %v1748_v25 = vld [vmem:[#allocation5] ss:$0 sm:$0xff] }
   0xe   :  { %v1946_v1 = vand.u32 127, %v54_v0  ;;  %v2207_v23 = vpack.c.bf16 %v1980_v9, %v1958_v3 }
  0x10   :  { %vm56_vm0 = vcmp.lt.s32.totalorder %v1946_v1, 32  ;;  %vm57_vm1 = vcmp.ge.s32.totalorder %v1946_v1, 32  ;;  %vm61_vm3 = vcmp.lt.s32.totalorder %v1946_v1, 96  ;;  %vm60_vm4 = vcmp.ge.s32.totalorder %v1946_v1, 64 }
  0x11   :  { %v90_v5 = vsel %vm57_vm1, %v1953_v2, 0.0  ;;  %v71_v6 = vsel %vm56_vm0, %v1953_v2, 0.0  ;;  %v92_v7 = vsel %vm57_vm1, %v1958_v3, 0.0  ;;  %v91_v8 = vsel %vm57_vm1, %v1963_v4, 0.0  ;;  %vm2007_vm6 = vmand %vm60_vm4, %vm61_vm3 }
  0x12   :  { %v94_v10 = vsel %vm75_vm2, %v90_v5, 0.0  ;;  %v76_v11 = vsel %vm75_vm2, %v71_v6, 0.0  ;;  %v100_v12 = vsel %vm75_vm2, %v92_v7, 0.0  ;;  %v72_v13 = vsel %vm56_vm0, %v1963_v4, 0.0 }
  0x13   :  { %95 = vadd.xlane.f32.xlu0 %v94_v10  ;;  %77 = vadd.xlane.f32.xlu1 %v76_v11  ;;  %v97_v14 = vsel %vm75_vm2, %v91_v8, 0.0  ;;  %v79_v15 = vsel %vm75_vm2, %v72_v13, 0.0  ;;  %v93_v16 = vsel %vm57_vm1, %v1980_v9, 0.0  ;;  %v73_v18 = vsel %vm56_vm0, %v1958_v3, 0.0 }
  0x14   :  { %101 = vadd.xlane.f32.xlu2 %v100_v12  ;;  %v103_v17 = vsel %vm75_vm2, %v93_v16, 0.0  ;;  %v74_v19 = vsel %vm56_vm0, %v1980_v9, 0.0  ;;  %v82_v20 = vsel %vm75_vm2, %v73_v18, 0.0  ;;  %vm58_vm5 = vcmp.lt.s32.totalorder %v1946_v1, 64 }
  0x15   :  { %v85_v21 = vsel %vm75_vm2, %v74_v19, 0.0  ;;  %vm2013_vm7 = vmand %vm57_vm1, %vm58_vm5 }
  0x1b   :  { %98 = vadd.xlane.f32.xlu0 %v97_v14  ;;  %80 = vadd.xlane.f32.xlu1 %v79_v15 }
  0x1c   :  { %104 = vadd.xlane.f32.xlu2 %v103_v17 }
  0x23   :  { %83 = vadd.xlane.f32.xlu0 %v82_v20  ;;  %86 = vadd.xlane.f32.xlu1 %v85_v21 }
  0x86   :  { %v96_v24 = vpop.xlane.xlu0 %95  ;;  %v78_v26 = vpop.xlane.xlu1 %77 }
  0x87   :  { %v109_v27 = vsel %vm2007_vm6, %v96_v24, 0.0  ;;  %v102_v28 = vpop.xlane.xlu2 %101 }
  0x88   :  { %v115_v29 = vsel %vm2013_vm7, %v78_v26, %v109_v27  ;;  %v111_v44 = vsel %vm2007_vm6, %v102_v28, 0.0 }
  0x89   :  { %v119_v30 = vsel %vm56_vm0, 1.0, %v115_v29 }
  0x8a   :  { %v2023_v31 = vmul.f32 %v1748_v25, %v119_v30 }
  0x8c   :  { %v2026_v32 = vmul.f32 0.70710677, %v2023_v31 }
  0x8e   :  { %v136_v33 = vmul.f32 %v2026_v32, %v2026_v32  ;;  %v99_v34 = vpop.xlane.xlu0 %98  ;;  %v81_v35 = vpop.xlane.xlu1 %80 }
  0x8f   :  { %v110_v36 = vsel %vm2007_vm6, %v99_v34, 0.0  ;;  %v105_v39 = vpop.xlane.xlu2 %104 }
  0x90   :  { %v2032_v37 = vmin.f32 %v136_v33, 16.0  ;;  %v116_v38 = vsel %vm2013_vm7, %v81_v35, %v110_v36  ;;  %v112_v45 = vsel %vm2007_vm6, %v105_v39, 0.0 }
  0x91   :  { %v120_v40 = vsel %vm56_vm0, 1.0, %v116_v38 }
  0x92   :  { %v2038_v41 = vmul.f32 %v1748_v25, %v120_v40  ;;  %v138_v42 = vmul.f32 2.1237322e-06, %v2032_v37  ;;  %v149_v43 = vmul.f32 3.8918573e-05, %v2032_v37 }
  0x94   :  { %v2047_v46 = vmul.f32 0.70710677, %v2038_v41  ;;  %v139_v47 = vadd.f32 0.00028619796, %v138_v42  ;;  %v150_v48 = vadd.f32 0.001143296, %v149_v43 }
  0x96   :  { %v176_v49 = vmul.f32 %v2047_v46, %v2047_v46  ;;  %v84_v50 = vpop.xlane.xlu0 %83  ;;  %v87_v51 = vpop.xlane.xlu1 %86  ;;  %v140_v52 = vmul.f32 %v139_v47, %v2032_v37  ;;  %v151_v53 = vmul.f32 %v150_v48, %v2032_v37 }
  0x97   :  { %v117_v54 = vsel %vm2013_vm7, %v84_v50, %v111_v44  ;;  %v118_v55 = vsel %vm2013_vm7, %v87_v51, %v112_v45 }
  0x98   :  { %v2057_v56 = vmin.f32 %v176_v49, 16.0  ;;  %v121_v57 = vsel %vm56_vm0, 1.0, %v117_v54  ;;  %v122_v58 = vsel %vm56_vm0, 1.0, %v118_v55  ;;  %v141_v59 = vadd.f32 0.0036580483, %v140_v52 }
  0x99   :  { %v2063_v60 = vmul.f32 %v1748_v25, %v121_v57  ;;  %v2065_v61 = vmul.f32 %v1748_v25, %v122_v58  ;;  %v152_v62 = vadd.f32 0.014752088, %v151_v53 }
  0x9a   :  { %v142_v63 = vmul.f32 %v141_v59, %v2032_v37  ;;  %v178_v5 = vmul.f32 2.1237322e-06, %v2057_v56  ;;  %v189_v6 = vmul.f32 3.8918573e-05, %v2057_v56 }
  0x9b   :  { %v2071_v7 = vmul.f32 0.70710677, %v2063_v60  ;;  %v2074_v8 = vmul.f32 0.70710677, %v2065_v61  ;;  %v153_v10 = vmul.f32 %v152_v62, %v2032_v37 }
  0x9c   :  { %v179_v11 = vadd.f32 0.00028619796, %v178_v5  ;;  %v190_v12 = vadd.f32 0.001143296, %v189_v6  ;;  %v143_v16 = vadd.f32 0.05243302, %v142_v63 }
  0x9d   :  { %v216_v13 = vmul.f32 %v2071_v7, %v2071_v7  ;;  %v256_v14 = vmul.f32 %v2074_v8, %v2074_v8  ;;  %v154_v15 = vadd.f32 0.112945676, %v153_v10 }
  0x9e   :  { %v180_v17 = vmul.f32 %v179_v11, %v2057_v56  ;;  %v191_v18 = vmul.f32 %v190_v12, %v2057_v56  ;;  %v144_v29 = vmul.f32 %v143_v16, %v2032_v37 }
  0x9f   :  { %v2083_v19 = vmin.f32 %v216_v13, 16.0  ;;  %v2085_v20 = vmin.f32 %v256_v14, 16.0  ;;  %v155_v21 = vmul.f32 %v154_v15, %v2032_v37 }
  0xa0   :  { %v181_v24 = vadd.f32 0.0036580483, %v180_v17  ;;  %v192_v25 = vadd.f32 0.014752088, %v191_v18  ;;  %v145_v49 = vadd.f32 0.18741608, %v144_v29 }
  0xa1   :  { %v156_v26 = vadd.f32 0.4994258, %v155_v21  ;;  %v218_v27 = vmul.f32 2.1237322e-06, %v2083_v19  ;;  %v229_v28 = vmul.f32 3.8918573e-05, %v2083_v19 }
  0xa2   :  { %v182_v30 = vmul.f32 %v181_v24, %v2057_v56  ;;  %v193_v33 = vmul.f32 %v192_v25, %v2057_v56  ;;  %v258_v34 = vmul.f32 2.1237322e-06, %v2085_v20  ;;  %v269_v39 = vmul.f32 3.8918573e-05, %v2085_v20 }
  0xa3   :  { %v157_v35 = vmul.f32 %v156_v26, %v2032_v37  ;;  %v219_v36 = vadd.f32 0.00028619796, %v218_v27  ;;  %v230_v38 = vadd.f32 0.001143296, %v229_v28  ;;  %v146_v58 = vmul.f32 %v145_v49, %v2032_v37 }
  0xa4   :  { %v194_v40 = vadd.f32 0.112945676, %v193_v33  ;;  %v259_v45 = vadd.f32 0.00028619796, %v258_v34  ;;  %v270_v48 = vadd.f32 0.001143296, %v269_v39 }
  0xa5   :  { %v158_v42 = vadd.f32 1.0, %v157_v35  ;;  %v220_v43 = vmul.f32 %v219_v36, %v2083_v19  ;;  %v231_v44 = vmul.f32 %v230_v38, %v2083_v19  ;;  %v183_v50 = vadd.f32 0.05243302, %v182_v30 }
  0xa6   :  { %v195_v47 = vmul.f32 %v194_v40, %v2057_v56  ;;  %v260_v54 = vmul.f32 %v259_v45, %v2085_v20  ;;  %v271_v55 = vmul.f32 %v270_v48, %v2085_v20  ;;  %v147_v15 = vadd.f32 1.1283791, %v146_v58 }
  0xa7   :  { %1765 = vrcp.f32 %v158_v42  ;;  %v221_v52 = vadd.f32 0.0036580483, %v220_v43  ;;  %v232_v53 = vadd.f32 0.014752088, %v231_v44  ;;  %v184_v59 = vmul.f32 %v183_v50, %v2057_v56 }
  0xa8   :  { %v196_v51 = vadd.f32 0.4994258, %v195_v47  ;;  %v272_v63 = vadd.f32 0.014752088, %v271_v55  ;;  %v261_v12 = vadd.f32 0.0036580483, %v260_v54  ;;  %v148_v30 = vmul.f32 %v147_v15, %v2026_v32 }
  0xa9   :  { %v233_v62 = vmul.f32 %v232_v53, %v2083_v19  ;;  %v222_v10 = vmul.f32 %v221_v52, %v2083_v19  ;;  %v185_v16 = vadd.f32 0.18741608, %v184_v59  ;;  %v168_v21 = vand.u32 2147483647, %v158_v42 }
  0xaa   :  { %v197_v57 = vmul.f32 %v196_v51, %v2057_v56  ;;  %v273_v13 = vmul.f32 %v272_v63, %v2085_v20  ;;  %v170_v24 = vand.u32 2147483648, %v158_v42  ;;  %v262_v26 = vmul.f32 %v261_v12, %v2085_v20 }
  0xab   :  { %v234_v11 = vadd.f32 0.112945676, %v233_v62  ;;  %v223_v25 = vadd.f32 0.05243302, %v222_v10  ;;  %v186_v33 = vmul.f32 %v185_v16, %v2057_v56  ;;  %vm164_vm9 = vweird.f32 %v158_v42 }
  0xac   :  { %v198_v5 = vadd.f32 1.0, %v197_v57  ;;  %v274_v18 = vadd.f32 0.112945676, %v273_v13  ;;  %vm169_vm11 = vcmp.eq.f32.partialorder %v168_v21, 8.507059e+37  ;;  %v171_v39 = vor.u32 1.1754944e-38, %v170_v24 }
  0xad   :  { %v1766_v6 = vpop.eup %1765  ;;  %v235_v37 = vmul.f32 %v234_v11, %v2083_v19  ;;  %v263_v43 = vadd.f32 0.05243302, %v262_v26  ;;  %v224_v45 = vmul.f32 %v223_v25, %v2083_v19  ;;  %v187_v49 = vadd.f32 1.1283791, %v186_v33 }
  0xae   :  { %v160_v14 = vmul.f32 %v1766_v6, %v158_v42  ;;  %1767 = vrcp.f32 %v198_v5  ;;  %vm165_vm8 = vweird.f32 %v1766_v6  ;;  %v275_v29 = vmul.f32 %v274_v18, %v2085_v20 }
  0xaf   :  { %v236_v28 = vadd.f32 0.4994258, %v235_v37  ;;  %vm166_vm10 = vmor %vm164_vm9, %vm165_vm8  ;;  %v208_v51 = vand.u32 2147483647, %v198_v5  ;;  %v210_v42 = vand.u32 2147483648, %v198_v5  ;;  %v264_v53 = vmul.f32 %v263_v43, %v2085_v20 }
  0xb0   :  { %v161_v17 = vsub.f32 1.0, %v160_v14  ;;  %v276_v38 = vadd.f32 0.4994258, %v275_v29  ;;  %v225_v57 = vadd.f32 0.18741608, %v224_v45  ;;  %vm204_vm13 = vweird.f32 %v198_v5 }
  0xb1   :  { %v237_v36 = vmul.f32 %v236_v28, %v2083_v19  ;;  %v128_v59 = vmul.f32 0.5, %v2023_v31  ;;  %v211_v63 = vor.u32 1.1754944e-38, %v210_v42  ;;  %vm209_vm15 = vcmp.eq.f32.partialorder %v208_v51, 8.507059e+37 }
  0xb2   :  { %v162_v27 = vmul.f32 %v1766_v6, %v161_v17  ;;  %v277_v48 = vmul.f32 %v276_v38, %v2085_v20  ;;  %v265_v11 = vadd.f32 0.18741608, %v264_v53  ;;  %v226_v15 = vmul.f32 %v225_v57, %v2083_v19 }
  0xb3   :  { %v238_v47 = vadd.f32 1.0, %v237_v36  ;;  %v129_v21 = vmul.f32 0.5, %v2038_v41  ;;  %v131_v42 = vmul.f32 0.5, %v2065_v61 }
  0xb4   :  { %v1768_v34 = vpop.eup %1767  ;;  %v163_v35 = vadd.f32 %v1766_v6, %v162_v27  ;;  %v278_v54 = vadd.f32 1.0, %v277_v48  ;;  %v266_v31 = vmul.f32 %v265_v11, %v2085_v20  ;;  %v227_v24 = vadd.f32 1.1283791, %v226_v15 }
  0xb5   :  { %v200_v40 = vmul.f32 %v1768_v34, %v198_v5  ;;  %1769 = vrcp.f32 %v238_v47  ;;  %vm205_vm12 = vweird.f32 %v1768_v34  ;;  %v248_v28 = vand.u32 2147483647, %v238_v47 }
  0xb6   :  { %v167_v44 = vsel %vm166_vm10, %v1766_v6, %v163_v35  ;;  %1771 = vrcp.f32 %v278_v54  ;;  %vm206_vm14 = vmor %vm204_vm13, %vm205_vm12  ;;  %v188_v6 = vmul.f32 %v187_v49, %v2047_v46  ;;  %v250_v46 = vand.u32 2147483648, %v238_v47 }
  0xb7   :  { %v172_v32 = vsel %vm169_vm11, %v171_v39, %v167_v44  ;;  %v201_v56 = vsub.f32 1.0, %v200_v40  ;;  %vm244_vm4 = vweird.f32 %v238_v47  ;;  %v267_v33 = vadd.f32 1.1283791, %v266_v31  ;;  %v1713_v31 = vld [vmem:[%s2514_s1 + $0x28] sm:$0xff] }
  0xb8   :  { %v173_v50 = vmul.f32 %v172_v32, %v148_v30  ;;  %v251_v35 = vor.u32 1.1754944e-38, %v250_v46  ;;  %v288_v20 = vand.u32 2147483647, %v278_v54  ;;  %v228_v41 = vmul.f32 %v227_v24, %v2071_v7  ;;  %v1711_v24 = vld [vmem:[%s2514_s1 + $0x18] sm:$0xff] }
  0xb9   :  { %v202_v52 = vmul.f32 %v1768_v34, %v201_v56  ;;  %vm249_vm9 = vcmp.eq.f32.partialorder %v248_v28, 8.507059e+37  ;;  %vm284_vm10 = vweird.f32 %v278_v54  ;;  %v268_v45 = vmul.f32 %v267_v33, %v2074_v8  ;;  %v1709_v28 = vld [vmem:[%s2514_s1 + $0x8] sm:$0xff] }
  0xba   :  { %v1524_v55 = vclamps-f32 %v173_v50, 1.0  ;;  %vm289_vm12 = vcmp.eq.f32.partialorder %v288_v20, 8.507059e+37  ;;  %v130_v56 = vmul.f32 0.5, %v2063_v60 }
  0xbb   :  { %v203_v58 = vadd.f32 %v1768_v34, %v202_v52  ;;  %v1770_v12 = vpop.eup %1769 }
  0xbc   :  { %v296_v62 = vadd.f32 1.0, %v1524_v55  ;;  %v240_v17 = vmul.f32 %v1770_v12, %v238_v47  ;;  %v1772_v5 = vpop.eup %1771  ;;  %vm245_vm1 = vweird.f32 %v1770_v12 }
  0xbd   :  { %v207_v10 = vsel %vm206_vm14, %v1768_v34, %v203_v58  ;;  %v280_v25 = vmul.f32 %v1772_v5, %v278_v54  ;;  %v290_v34 = vand.u32 2147483648, %v278_v54  ;;  %vm246_vm5 = vmor %vm244_vm4, %vm245_vm1  ;;  %vm285_vm8 = vweird.f32 %v1772_v5 }
  0xbe   :  { %v300_v13 = vmul.f32 %v296_v62, %v128_v59  ;;  %v212_v14 = vsel %vm209_vm15, %v211_v63, %v207_v10  ;;  %v241_v18 = vsub.f32 1.0, %v240_v17  ;;  %vm286_vm11 = vmor %vm284_vm10, %vm285_vm8 }
  0xbf   :  { %v213_v16 = vmul.f32 %v212_v14, %v188_v6  ;;  %v281_v29 = vsub.f32 1.0, %v280_v25  ;;  %v291_v44 = vor.u32 1.1754944e-38, %v290_v34  ;;  %v1710_v25 = vld [vmem:[%s2514_s1 + $0x10] sm:$0xff] }
  0xc0   :  { %306 = vadd.xlane.f32.xlu2 %v300_v13  ;;  %v242_v27 = vmul.f32 %v1770_v12, %v241_v18  ;;  %v1714_v18 = vld [vmem:[%s2514_s1 + $0x30] sm:$0xff] }
  0xc1   :  { %v1525_v37 = vclamps-f32 %v213_v16, 1.0  ;;  %v282_v36 = vmul.f32 %v1772_v5, %v281_v29 }
  0xc2   :  { %v243_v30 = vadd.f32 %v1770_v12, %v242_v27 }
  0xc3   :  { %v297_v26 = vadd.f32 1.0, %v1525_v37  ;;  %v283_v40 = vadd.f32 %v1772_v5, %v282_v36  ;;  %v1715_v37 = vld [vmem:[%s2514_s1 + $0x38] sm:$0xff] }
  0xc4   :  { %v247_v38 = vsel %vm246_vm5, %v1770_v12, %v243_v30  ;;  %470 = vmatpush.bf16.msra.mxu0 %v1715_v37  ;;  %v1708_v30 = vld [vmem:[%s2514_s1] sm:$0xff] }
  0xc5   :  { %v301_v19 = vmul.f32 %v297_v26, %v129_v21  ;;  %v252_v39 = vsel %vm249_vm9, %v251_v35, %v247_v38  ;;  %v287_v47 = vsel %vm286_vm11, %v1772_v5, %v283_v40  ;;  %v1712_v21 = vld [vmem:[%s2514_s1 + $0x20] sm:$0xff] }
  0xc6   :  { %v253_v43 = vmul.f32 %v252_v39, %v228_v41  ;;  %v292_v32 = vsel %vm289_vm12, %v291_v44, %v287_v47 }
  0xc7   :  { %308 = vadd.xlane.f32.xlu0 %v301_v19  ;;  %v293_v49 = vmul.f32 %v292_v32, %v268_v45 }
  0xc8   :  { %v1526_v48 = vclamps-f32 %v253_v43, 1.0  ;;  %471 = vmatpush.bf16.msra.mxu0 %v1714_v18 }
  0xc9   :  { %v1527_v51 = vclamps-f32 %v293_v49, 1.0 }
  0xca   :  { %v298_v50 = vadd.f32 1.0, %v1526_v48 }
  0xcb   :  { %v299_v52 = vadd.f32 1.0, %v1527_v51 }
  0xcc   :  { %v302_v7 = vmul.f32 %v298_v50, %v130_v56  ;;  %472 = vmatpush.bf16.msra.mxu0 %v1713_v31 }
  0xcd   :  { %v303_v53 = vmul.f32 %v299_v52, %v131_v42  ;;  %v1749_v42 = vld [vmem:[#allocation5 + $0x3] ss:$0 sm:$0xff] }
  0xce   :  { %310 = vadd.xlane.f32.xlu1 %v302_v7 }
  0xcf   :  { %312 = vadd.xlane.f32.xlu2 %v303_v53 }
  0xd0   :  { %473 = vmatpush.bf16.msra.mxu0 %v1712_v21 }
  0xd4   :  { %474 = vmatpush.bf16.msra.mxu0 %v1711_v24 }
  0xd8   :  { %475 = vmatpush.bf16.msra.mxu0 %v1710_v25 }
  0xdc   :  { %476 = vmatpush.bf16.msra.mxu0 %v1709_v28 }
  0xe0   :  { %477 = vmatpush.bf16.msra.mxu0 %v1708_v30 }
 0x133   :  { %v307_v54 = vpop.xlane.xlu2 %306 }
 0x134   :  { %v314_v55 = vmul.f32 0.010416667, %v307_v54 }
 0x136   :  { %v318_v57 = vsub.f32 %v300_v13, %v314_v55 }
 0x138   :  { %v2127_v8 = vsel %vm61_vm3, %v318_v57, 0.0 }
 0x139   :  { %v328_v58 = vmul.f32 %v2127_v8, %v2127_v8 }
 0x13a   :  { %v309_v60 = vpop.xlane.xlu0 %308 }
 0x13b   :  { %332 = vadd.xlane.f32.xlu0 %v328_v58  ;;  %v315_v59 = vmul.f32 0.010416667, %v309_v60  ;;  %v1750_v60 = vld [vmem:[#allocation5 + $0x6] ss:$0 sm:$0xff] }
 0x13d   :  { %v319_v62 = vsub.f32 %v301_v19, %v315_v59 }
 0x13f   :  { %v2133_v61 = vsel %vm61_vm3, %v319_v62, 0.0 }
 0x140   :  { %v329_v63 = vmul.f32 %v2133_v61, %v2133_v61 }
 0x141   :  { %v311_v6 = vpop.xlane.xlu1 %310 }
 0x142   :  { %334 = vadd.xlane.f32.xlu1 %v329_v63  ;;  %v316_v10 = vmul.f32 0.010416667, %v311_v6  ;;  %v313_v11 = vpop.xlane.xlu2 %312 }
 0x143   :  { %v317_v13 = vmul.f32 0.010416667, %v313_v11 }
 0x144   :  { %v320_v12 = vsub.f32 %v302_v7, %v316_v10 }
 0x145   :  { %v321_v15 = vsub.f32 %v303_v53, %v317_v13 }
 0x146   :  { %v2139_v14 = vsel %vm61_vm3, %v320_v12, 0.0 }
 0x147   :  { %v330_v16 = vmul.f32 %v2139_v14, %v2139_v14  ;;  %v2145_v17 = vsel %vm61_vm3, %v321_v15, 0.0 }
 0x148   :  { %v331_v5 = vmul.f32 %v2145_v17, %v2145_v17 }
 0x149   :  { %336 = vadd.xlane.f32.xlu2 %v330_v16 }
 0x14a   :  { %338 = vadd.xlane.f32.xlu0 %v331_v5 }
 0x1ae   :  { %v333_v46 = vpop.xlane.xlu0 %332 }
 0x1af   :  { %v340_v26 = vmul.f32 0.010416667, %v333_v46 }
 0x1b1   :  { %v344_v27 = vadd.f32 1e-05, %v340_v26 }
 0x1b3   :  { %1773 = vrsqrt.f32 %v344_v27  ;;  %vm354_vm14 = vweird.f32 %v344_v27 }
 0x1b5   :  { %v335_v29 = vpop.xlane.xlu1 %334 }
 0x1b6   :  { %v341_v19 = vmul.f32 0.010416667, %v335_v29 }
 0x1b8   :  { %v345_v33 = vadd.f32 1e-05, %v341_v19 }
 0x1b9   :  { %v1774_v34 = vpop.eup %1773 }
 0x1ba   :  { %v349_v35 = vmul.f32 %v1774_v34, %v344_v27  ;;  %1775 = vrsqrt.f32 %v345_v33  ;;  %vm355_vm13 = vweird.f32 %v1774_v34  ;;  %vm364_vm4 = vweird.f32 %v345_v33 }
 0x1bb   :  { %vm356_vm15 = vmor %vm354_vm14, %vm355_vm13 }
 0x1bc   :  { %v350_v36 = vmul.f32 %v1774_v34, %v349_v35  ;;  %v337_v41 = vpop.xlane.xlu2 %336  ;;  %vm2180_vm14 = vmpackc.low %vm2007_vm6, %vm2007_vm6 }
 0x1bd   :  { %v342_v40 = vmul.f32 0.010416667, %v337_v41  ;;  %v339_v45 = vpop.xlane.xlu0 %338 }
 0x1be   :  { %v351_v20 = vmul.f32 0.5, %v350_v36  ;;  %v343_v32 = vmul.f32 0.010416667, %v339_v45 }
 0x1bf   :  { %v346_v47 = vadd.f32 1e-05, %v342_v40 }
 0x1c0   :  { %v1776_v38 = vpop.eup %1775  ;;  %v352_v39 = vsub.f32 1.5, %v351_v20  ;;  %v347_v56 = vadd.f32 1e-05, %v343_v32 }
 0x1c1   :  { %v359_v43 = vmul.f32 %v1776_v38, %v345_v33  ;;  %1777 = vrsqrt.f32 %v346_v47  ;;  %vm365_vm1 = vweird.f32 %v1776_v38  ;;  %vm374_vm9 = vweird.f32 %v346_v47  ;;  %v1751_v33 = vld [vmem:[#allocation5 + $0x1] ss:$0 sm:$0xff] }
 0x1c2   :  { %v353_v44 = vmul.f32 %v1774_v34, %v352_v39  ;;  %1779 = vrsqrt.f32 %v347_v56  ;;  %vm366_vm5 = vmor %vm364_vm4, %vm365_vm1  ;;  %vm384_vm12 = vweird.f32 %v347_v56  ;;  %v2199_v39 = vpack.c.bf16 %v1963_v4, %v1953_v2 }
 0x1c3   :  { %v360_v48 = vmul.f32 %v1776_v38, %v359_v43 }
 0x1c4   :  { %v357_v50 = vsel %vm356_vm15, %v1774_v34, %v353_v44  ;;  %vm2191_vm15 = vmpackc.low %vm2013_vm7, %vm2013_vm7 }
 0x1c5   :  { %v361_v49 = vmul.f32 0.5, %v360_v48  ;;  %v388_v7 = vmul.f32 %v357_v50, %v2127_v8 }
 0x1c7   :  { %v362_v51 = vsub.f32 1.5, %v361_v49  ;;  %v1778_v53 = vpop.eup %1777  ;;  %v393_v58 = vmul.f32 %v1749_v42, %v388_v7 }
 0x1c8   :  { %v369_v54 = vmul.f32 %v1778_v53, %v346_v47  ;;  %v1780_v59 = vpop.eup %1779  ;;  %vm375_vm8 = vweird.f32 %v1778_v53 }
 0x1c9   :  { %v363_v52 = vmul.f32 %v1776_v38, %v362_v51  ;;  %v379_v63 = vmul.f32 %v1780_v59, %v347_v56  ;;  %v398_v12 = vadd.f32 %v1750_v60, %v393_v58  ;;  %vm385_vm10 = vweird.f32 %v1780_v59  ;;  %vm376_vm11 = vmor %vm374_vm9, %vm375_vm8 }
 0x1ca   :  { %v370_v62 = vmul.f32 %v1778_v53, %v369_v54  ;;  %vm386_vm13 = vmor %vm384_vm12, %vm385_vm10 }
 0x1cb   :  { %v367_v55 = vsel %vm366_vm5, %v1776_v38, %v363_v52  ;;  %v380_v11 = vmul.f32 %v1780_v59, %v379_v63 }
 0x1cc   :  { %v389_v57 = vmul.f32 %v367_v55, %v2133_v61  ;;  %v371_v10 = vmul.f32 0.5, %v370_v62 }
 0x1cd   :  { %v381_v15 = vmul.f32 0.5, %v380_v11 }
 0x1ce   :  { %v394_v6 = vmul.f32 %v1749_v42, %v389_v57  ;;  %v372_v8 = vsub.f32 1.5, %v371_v10 }
 0x1cf   :  { %v382_v37 = vsub.f32 1.5, %v381_v15 }
 0x1d0   :  { %v399_v13 = vadd.f32 %v1750_v60, %v394_v6  ;;  %v373_v5 = vmul.f32 %v1778_v53, %v372_v8 }
 0x1d1   :  { %v383_v18 = vmul.f32 %v1780_v59, %v382_v37 }
 0x1d2   :  { %v403_v16 = vpack.c.bf16 %v399_v13, %v398_v12  ;;  %v377_v61 = vsel %vm376_vm11, %v1778_v53, %v373_v5 }
 0x1d3   :  { %v390_v31 = vmul.f32 %v377_v61, %v2139_v14  ;;  %v387_v21 = vsel %vm386_vm13, %v1780_v59, %v383_v18 }
 0x1d4   :  { %478 = vmatmul.bf16.vlgmr.msra.gmra.mxu0 %v403_v16  ;;  %v391_v24 = vmul.f32 %v387_v21, %v2145_v17 }
 0x1d5   :  { %v395_v46 = vmul.f32 %v1749_v42, %v390_v31 }
 0x1d6   :  { %v396_v25 = vmul.f32 %v1749_v42, %v391_v24 }
 0x1d7   :  { %v400_v26 = vadd.f32 %v1750_v60, %v395_v46 }
 0x1d8   :  { %v401_v27 = vadd.f32 %v1750_v60, %v396_v25 }
 0x1da   :  { %v404_v28 = vpack.c.bf16 %v401_v27, %v400_v26 }
 0x1e4   :  { %483 = vmatmul.bf16.gmra.mxu0 %v404_v28 }
 0x251   :  { %v479_v29 = vpop.f32.mrf.mxu0 }
 0x252   :  { %v480_v41 = vadd.f32 %v1751_v33, %v479_v29 }
 0x254   :  { %v501_v40 = vsel %vm56_vm0, %v480_v41, 0.0 }
 0x259   :  { %v481_v19 = vpop.f32.mrf.mxu0 }
 0x25a   :  { %v482_v17 = vadd.f32 %v1751_v33, %v481_v19 }
 0x25c   :  { %v1564_v38 = vpack.c.bf16 %v482_v17, %v480_v41  ;;  %v502_v3 = vsel %vm56_vm0, %v482_v17, 0.0 }
 0x261   :  { %v484_v30 = vpop.f32.mrf.mxu0 }
 0x262   :  { %v485_v35 = vadd.f32 %v1751_v33, %v484_v30 }
 0x264   :  { %v503_v54 = vsel %vm56_vm0, %v485_v35, 0.0 }
 0x269   :  { %v486_v34 = vpop.f32.mrf.mxu0 }
 0x26a   :  { %v487_v36 = vadd.f32 %v1751_v33, %v486_v34 }
 0x26c   :  { %v1561_v20 = vpack.c.bf16 %v487_v36, %v485_v35  ;;  %v504_v18 = vsel %vm56_vm0, %v487_v36, 0.0 }
 0x26e   :  { %1562 = vmatpush.bf16.msk.msra.mxu1 %vm2180_vm14, %v1561_v20 }
 0x272   :  { %1565 = vmatpush.bf16.msk.msra.mxu1 %vm2180_vm14, %v1564_v38 }
 0x276   :  { %1568 = vmatpush.bf16.msk.msra.mxu1 %vm2191_vm15, %v1561_v20 }
 0x27a   :  { %1571 = vmatpush.bf16.msk.msra.mxu1 %vm2191_vm15, %v1564_v38 }
 0x27d   :  { %1572 = vmatmul.msk.bf16.vlgmr.msra.gmra.mxu1 %vm75_vm2, %v2199_v39 }
 0x28d   :  { %1573 = vmatmul.msk.bf16.gmra.mxu1 %vm75_vm2, %v2207_v23 }
 0x2fa   :  { %v520_v43 = vpop.f32.mrf.mxu1 }
 0x2fb   :  { %v2213_v44 = vadd.f32 %v520_v43, %v501_v40 }
 0x2fd   :  { %v2216_v2 = vmul.f32 0.70710677, %v2213_v44 }
 0x2ff   :  { %v542_v4 = vmul.f32 %v2216_v2, %v2216_v2 }
 0x301   :  { %v543_v45 = vmin.f32 %v542_v4, 16.0 }
 0x302   :  { %v522_v9 = vpop.f32.mrf.mxu1 }
 0x303   :  { %v544_v47 = vmul.f32 2.1237322e-06, %v543_v45  ;;  %v2222_v48 = vadd.f32 %v522_v9, %v502_v3  ;;  %v555_v32 = vmul.f32 3.8918573e-05, %v543_v45 }
 0x305   :  { %v545_v49 = vadd.f32 0.00028619796, %v544_v47  ;;  %v2225_v56 = vmul.f32 0.70710677, %v2222_v48  ;;  %v556_v50 = vadd.f32 0.001143296, %v555_v32 }
 0x307   :  { %v546_v51 = vmul.f32 %v545_v49, %v543_v45  ;;  %v582_v7 = vmul.f32 %v2225_v56, %v2225_v56  ;;  %v557_v42 = vmul.f32 %v556_v50, %v543_v45 }
 0x309   :  { %v547_v52 = vadd.f32 0.0036580483, %v546_v51  ;;  %v2229_v53 = vmin.f32 %v582_v7, 16.0  ;;  %v558_v57 = vadd.f32 0.014752088, %v557_v42 }
 0x30a   :  { %v525_v55 = vpop.f32.mrf.mxu1 }
 0x30b   :  { %v584_v58 = vmul.f32 2.1237322e-06, %v2229_v53  ;;  %v2234_v60 = vadd.f32 %v525_v55, %v503_v54  ;;  %v595_v59 = vmul.f32 3.8918573e-05, %v2229_v53  ;;  %v559_v62 = vmul.f32 %v558_v57, %v543_v45 }
 0x30c   :  { %v548_v63 = vmul.f32 %v547_v52, %v543_v45 }
 0x30d   :  { %v585_v6 = vadd.f32 0.00028619796, %v584_v58  ;;  %v2238_v10 = vmul.f32 0.70710677, %v2234_v60  ;;  %v560_v11 = vadd.f32 0.112945676, %v559_v62 }
 0x30e   :  { %v596_v12 = vadd.f32 0.001143296, %v595_v59  ;;  %v549_v5 = vadd.f32 0.05243302, %v548_v63 }
 0x30f   :  { %v586_v13 = vmul.f32 %v585_v6, %v2229_v53  ;;  %v622_v8 = vmul.f32 %v2238_v10, %v2238_v10  ;;  %v561_v15 = vmul.f32 %v560_v11, %v543_v45 }
 0x310   :  { %v597_v16 = vmul.f32 %v596_v12, %v2229_v53  ;;  %v550_v29 = vmul.f32 %v549_v5, %v543_v45 }
 0x311   :  { %v587_v37 = vadd.f32 0.0036580483, %v586_v13  ;;  %v2244_v61 = vmin.f32 %v622_v8, 16.0  ;;  %v562_v21 = vadd.f32 0.4994258, %v561_v15 }
 0x312   :  { %v527_v31 = vpop.f32.mrf.mxu1  ;;  %v598_v24 = vadd.f32 0.014752088, %v597_v16  ;;  %v551_v41 = vadd.f32 0.18741608, %v550_v29 }
 0x313   :  { %v2248_v46 = vadd.f32 %v527_v31, %v504_v18  ;;  %v624_v25 = vmul.f32 2.1237322e-06, %v2244_v61  ;;  %v563_v26 = vmul.f32 %v562_v21, %v543_v45  ;;  %v635_v28 = vmul.f32 3.8918573e-05, %v2244_v61 }
 0x314   :  { %v599_v27 = vmul.f32 %v598_v24, %v2229_v53  ;;  %v588_v19 = vmul.f32 %v587_v37, %v2229_v53  ;;  %v552_v50 = vmul.f32 %v551_v41, %v543_v45 }
 0x315   :  { %v625_v30 = vadd.f32 0.00028619796, %v624_v25  ;;  %v2255_v33 = vmul.f32 0.70710677, %v2248_v46  ;;  %v564_v34 = vadd.f32 1.0, %v563_v26 }
 0x316   :  { %v600_v35 = vadd.f32 0.112945676, %v599_v27  ;;  %v636_v36 = vadd.f32 0.001143296, %v635_v28  ;;  %v589_v40 = vadd.f32 0.05243302, %v588_v19 }
 0x317   :  { %v626_v17 = vmul.f32 %v625_v30, %v2244_v61  ;;  %v662_v20 = vmul.f32 %v2255_v33, %v2255_v33  ;;  %1781 = vrcp.f32 %v564_v34  ;;  %v553_v45 = vadd.f32 1.1283791, %v552_v50 }
 0x318   :  { %v601_v38 = vmul.f32 %v600_v35, %v2229_v53  ;;  %v637_v4 = vmul.f32 %v636_v36, %v2244_v61  ;;  %v590_v42 = vmul.f32 %v589_v40, %v2229_v53  ;;  %v576_v13 = vand.u32 2147483648, %v564_v34 }
 0x319   :  { %v2261_v43 = vmin.f32 %v662_v20, 16.0  ;;  %v627_v3 = vadd.f32 0.0036580483, %v626_v17  ;;  %v574_v16 = vand.u32 2147483647, %v564_v34  ;;  %vm570_vm7 = vweird.f32 %v564_v34 }
 0x31a   :  { %v602_v9 = vadd.f32 0.4994258, %v601_v38  ;;  %v638_v32 = vadd.f32 0.014752088, %v637_v4  ;;  %v591_v12 = vadd.f32 0.18741608, %v590_v42  ;;  %v554_v25 = vmul.f32 %v553_v45, %v2216_v2 }
 0x31b   :  { %v664_v47 = vmul.f32 2.1237322e-06, %v2261_v43  ;;  %v675_v49 = vmul.f32 3.8918573e-05, %v2261_v43  ;;  %v628_v59 = vmul.f32 %v627_v3, %v2244_v61  ;;  %v577_v26 = vor.u32 1.1754944e-38, %v576_v13 }
 0x31c   :  { %v603_v51 = vmul.f32 %v602_v9, %v2229_v53  ;;  %v639_v54 = vmul.f32 %v638_v32, %v2244_v61  ;;  %v592_v29 = vmul.f32 %v591_v12, %v2229_v53  ;;  %vm575_vm4 = vcmp.eq.f32.partialorder %v574_v16, 8.507059e+37 }
 0x31d   :  { %v1782_v7 = vpop.eup %1781  ;;  %v665_v52 = vadd.f32 0.00028619796, %v664_v47  ;;  %v676_v55 = vadd.f32 0.001143296, %v675_v49  ;;  %v629_v37 = vadd.f32 0.05243302, %v628_v59 }
 0x31e   :  { %v566_v57 = vmul.f32 %v1782_v7, %v564_v34  ;;  %v604_v58 = vadd.f32 1.0, %v603_v51  ;;  %v640_v62 = vadd.f32 0.112945676, %v639_v54  ;;  %vm571_vm6 = vweird.f32 %v1782_v7 }
 0x31f   :  { %v677_v63 = vmul.f32 %v676_v55, %v2261_v43  ;;  %v666_v6 = vmul.f32 %v665_v52, %v2261_v43  ;;  %vm572_vm1 = vmor %vm570_vm7, %vm571_vm6  ;;  %v630_v35 = vmul.f32 %v629_v37, %v2244_v61  ;;  %v593_v40 = vadd.f32 1.1283791, %v592_v29 }
 0x320   :  { %v567_v11 = vsub.f32 1.0, %v566_v57  ;;  %1783 = vrcp.f32 %v604_v58  ;;  %v641_v8 = vmul.f32 %v640_v62, %v2244_v61  ;;  %v616_v3 = vand.u32 2147483648, %v604_v58 }
 0x321   :  { %v678_v5 = vadd.f32 0.014752088, %v677_v63  ;;  %v667_v31 = vadd.f32 0.0036580483, %v666_v6  ;;  %v614_v53 = vand.u32 2147483647, %v604_v58  ;;  %vm610_vm8 = vweird.f32 %v604_v58 }
 0x322   :  { %v568_v15 = vmul.f32 %v1782_v7, %v567_v11  ;;  %v642_v18 = vadd.f32 0.4994258, %v641_v8  ;;  %v534_v32 = vmul.f32 0.5, %v2213_v44  ;;  %v631_v49 = vadd.f32 0.18741608, %v630_v35 }
 0x323   :  { %v679_v24 = vmul.f32 %v678_v5, %v2261_v43  ;;  %v668_v34 = vmul.f32 %v667_v31, %v2261_v43  ;;  %v617_v54 = vor.u32 1.1754944e-38, %v616_v3  ;;  %v594_v55 = vmul.f32 %v593_v40, %v2225_v56 }
 0x324   :  { %v569_v21 = vadd.f32 %v1782_v7, %v568_v15  ;;  %v643_v27 = vmul.f32 %v642_v18, %v2244_v61  ;;  %vm615_vm10 = vcmp.eq.f32.partialorder %v614_v53, 8.507059e+37  ;;  %v632_v63 = vmul.f32 %v631_v49, %v2244_v61 }
 0x325   :  { %v680_v30 = vadd.f32 0.112945676, %v679_v24  ;;  %v669_v50 = vadd.f32 0.05243302, %v668_v34  ;;  %v535_v13 = vmul.f32 0.5, %v2222_v48 }
 0x326   :  { %v1784_v28 = vpop.eup %1783  ;;  %v573_v19 = vsel %vm572_vm1, %v1782_v7, %v569_v21  ;;  %v644_v41 = vadd.f32 1.0, %v643_v27  ;;  %v633_v8 = vadd.f32 1.1283791, %v632_v63 }
 0x327   :  { %v578_v36 = vsel %vm575_vm4, %v577_v26, %v573_v19  ;;  %v606_v17 = vmul.f32 %v1784_v28, %v604_v58  ;;  %v681_v2 = vmul.f32 %v680_v30, %v2261_v43  ;;  %vm611_vm5 = vweird.f32 %v1784_v28 }
 0x328   :  { %v579_v20 = vmul.f32 %v578_v36, %v554_v25  ;;  %1785 = vrcp.f32 %v644_v41  ;;  %vm612_vm9 = vmor %vm610_vm8, %vm611_vm5  ;;  %v670_v44 = vmul.f32 %v669_v50, %v2261_v43  ;;  %v656_v15 = vand.u32 2147483648, %v644_v41 }
 0x329   :  { %v607_v38 = vsub.f32 1.0, %v606_v17  ;;  %v682_v47 = vadd.f32 0.4994258, %v681_v2  ;;  %v654_v37 = vand.u32 2147483647, %v644_v41  ;;  %vm650_vm12 = vweird.f32 %v644_v41 }
 0x32a   :  { %v1574_v4 = vclamps-f32 %v579_v20, 1.0  ;;  %v671_v56 = vadd.f32 0.18741608, %v670_v44  ;;  %v657_v24 = vor.u32 1.1754944e-38, %v656_v15  ;;  %v634_v26 = vmul.f32 %v633_v8, %v2238_v10  ;;  %v1720_v8 = vld [vmem:[%s2514_s1 + $0x60] sm:$0xff] }
 0x32b   :  { %v608_v9 = vmul.f32 %v1784_v28, %v607_v38  ;;  %v683_v42 = vmul.f32 %v682_v47, %v2261_v43  ;;  %vm655_vm6 = vcmp.eq.f32.partialorder %v654_v37, 8.507059e+37 }
 0x32c   :  { %v702_v51 = vadd.f32 1.0, %v1574_v4  ;;  %v672_v21 = vmul.f32 %v671_v56, %v2261_v43  ;;  %v536_v43 = vmul.f32 0.5, %v2234_v60  ;;  %v1719_v56 = vld [vmem:[%s2514_s1 + $0x58] sm:$0xff] }
 0x32d   :  { %v609_v7 = vadd.f32 %v1784_v28, %v608_v9  ;;  %v684_v59 = vadd.f32 1.0, %v683_v42  ;;  %v537_v9 = vmul.f32 0.5, %v2248_v46 }
 0x32e   :  { %v2282_v52 = vmul.f32 %v702_v51, %v534_v32  ;;  %v1786_v62 = vpop.eup %1785  ;;  %v673_v30 = vadd.f32 1.1283791, %v672_v21 }
 0x32f   :  { %v613_v57 = vsel %vm612_vm9, %v1784_v28, %v609_v7  ;;  %v646_v11 = vmul.f32 %v1786_v62, %v644_v41  ;;  %1787 = vrcp.f32 %v684_v59  ;;  %vm651_vm11 = vweird.f32 %v1786_v62 }
 0x330   :  { %712 = vadd.xlane.f32.xlu1 %v2282_v52  ;;  %v618_v6 = vsel %vm615_vm10, %v617_v54, %v613_v57  ;;  %vm652_vm13 = vmor %vm650_vm12, %vm651_vm11  ;;  %v696_v19 = vand.u32 2147483648, %v684_v59  ;;  %v694_v36 = vand.u32 2147483647, %v684_v59  ;;  %vm690_vm1 = vweird.f32 %v684_v59 }
 0x331   :  { %v619_v58 = vmul.f32 %v618_v6, %v594_v55  ;;  %v647_v12 = vsub.f32 1.0, %v646_v11  ;;  %v674_v10 = vmul.f32 %v673_v30, %v2255_v33 }
 0x332   :  { %v697_v41 = vor.u32 1.1754944e-38, %v696_v19  ;;  %vm695_vm5 = vcmp.eq.f32.partialorder %v694_v36, 8.507059e+37 }
 0x333   :  { %v1575_v45 = vclamps-f32 %v619_v58, 1.0  ;;  %v648_v5 = vmul.f32 %v1786_v62, %v647_v12  ;;  %v1722_v12 = vld [vmem:[%s2514_s1 + $0x70] sm:$0xff] }
 0x335   :  { %v703_v16 = vadd.f32 1.0, %v1575_v45  ;;  %v1788_v61 = vpop.eup %1787  ;;  %v649_v31 = vadd.f32 %v1786_v62, %v648_v5  ;;  %v1723_v45 = vld [vmem:[%s2514_s1 + $0x78] sm:$0xff] }
 0x336   :  { %v686_v25 = vmul.f32 %v1788_v61, %v684_v59  ;;  %vm691_vm7 = vweird.f32 %v1788_v61  ;;  %875 = vmatpush.bf16.msra.mxu2 %v1723_v45 }
 0x337   :  { %v707_v18 = vmul.f32 %v703_v16, %v535_v13  ;;  %v653_v48 = vsel %vm652_vm13, %v1786_v62, %v649_v31  ;;  %vm692_vm4 = vmor %vm690_vm1, %vm691_vm7  ;;  %v1721_v13 = vld [vmem:[%s2514_s1 + $0x68] sm:$0xff]  ;;  %v1718_v16 = vld [vmem:[%s2514_s1 + $0x50] sm:$0xff] }
 0x338   :  { %v658_v27 = vsel %vm655_vm6, %v657_v24, %v653_v48  ;;  %v687_v28 = vsub.f32 1.0, %v686_v25 }
 0x339   :  { %714 = vadd.xlane.f32.xlu2 %v707_v18  ;;  %v659_v29 = vmul.f32 %v658_v27, %v634_v26 }
 0x33a   :  { %v688_v35 = vmul.f32 %v1788_v61, %v687_v28  ;;  %876 = vmatpush.bf16.msra.mxu2 %v1722_v12 }
 0x33b   :  { %v1576_v17 = vclamps-f32 %v659_v29, 1.0 }
 0x33c   :  { %v689_v34 = vadd.f32 %v1788_v61, %v688_v35 }
 0x33d   :  { %v704_v20 = vadd.f32 1.0, %v1576_v17 }
 0x33e   :  { %v693_v2 = vsel %vm692_vm4, %v1788_v61, %v689_v34  ;;  %877 = vmatpush.bf16.msra.mxu2 %v1721_v13  ;;  %v1717_v61 = vld [vmem:[%s2514_s1 + $0x48] sm:$0xff] }
 0x33f   :  { %v708_v38 = vmul.f32 %v704_v20, %v536_v43  ;;  %v698_v40 = vsel %vm695_vm5, %v697_v41, %v693_v2 }
 0x340   :  { %v699_v4 = vmul.f32 %v698_v40, %v674_v10 }
 0x341   :  { %716 = vadd.xlane.f32.xlu0 %v708_v38 }
 0x342   :  { %v1577_v3 = vclamps-f32 %v699_v4, 1.0  ;;  %878 = vmatpush.bf16.msra.mxu2 %v1720_v8 }
 0x344   :  { %v705_v53 = vadd.f32 1.0, %v1577_v3  ;;  %v1752_v3 = vld [vmem:[#allocation5 + $0x4] ss:$0 sm:$0xff] }
 0x346   :  { %v709_v47 = vmul.f32 %v705_v53, %v537_v9  ;;  %879 = vmatpush.bf16.msra.mxu2 %v1719_v56 }
 0x348   :  { %718 = vadd.xlane.f32.xlu1 %v709_v47 }
 0x34a   :  { %880 = vmatpush.bf16.msra.mxu2 %v1718_v16 }
 0x34e   :  { %881 = vmatpush.bf16.msra.mxu2 %v1717_v61 }
 0x3a3   :  { %v713_v32 = vpop.xlane.xlu1 %712 }
 0x3a4   :  { %v720_v49 = vmul.f32 0.010416667, %v713_v32 }
 0x3a6   :  { %v724_v60 = vsub.f32 %v2282_v52, %v720_v49 }
 0x3a8   :  { %v2297_v50 = vsel %vm61_vm3, %v724_v60, 0.0 }
 0x3a9   :  { %v732_v33 = vmul.f32 %v2297_v50, %v2297_v50 }
 0x3ab   :  { %736 = vadd.xlane.f32.xlu2 %v732_v33  ;;  %v1753_v33 = vld [vmem:[#allocation5 + $0x7] ss:$0 sm:$0xff] }
 0x3ac   :  { %v715_v51 = vpop.xlane.xlu2 %714 }
 0x3ad   :  { %v721_v7 = vmul.f32 0.010416667, %v715_v51 }
 0x3af   :  { %v725_v42 = vsub.f32 %v707_v18, %v721_v7  ;;  %v1716_v18 = vld [vmem:[%s2514_s1 + $0x40] sm:$0xff] }
 0x3b0   :  { %882 = vmatpush.bf16.msra.mxu2 %v1716_v18 }
 0x3b1   :  { %v2303_v46 = vsel %vm61_vm3, %v725_v42, 0.0 }
 0x3b2   :  { %v733_v54 = vmul.f32 %v2303_v46, %v2303_v46 }
 0x3b4   :  { %738 = vadd.xlane.f32.xlu0 %v733_v54  ;;  %v717_v52 = vpop.xlane.xlu0 %716 }
 0x3b5   :  { %v722_v55 = vmul.f32 0.010416667, %v717_v52 }
 0x3b7   :  { %v726_v57 = vsub.f32 %v708_v38, %v722_v55 }
 0x3b9   :  { %v2309_v59 = vsel %vm61_vm3, %v726_v57, 0.0 }
 0x3ba   :  { %v734_v62 = vmul.f32 %v2309_v59, %v2309_v59 }
 0x3bb   :  { %v719_v63 = vpop.xlane.xlu1 %718 }
 0x3bc   :  { %740 = vadd.xlane.f32.xlu1 %v734_v62  ;;  %v723_v44 = vmul.f32 0.010416667, %v719_v63 }
 0x3be   :  { %v727_v6 = vsub.f32 %v709_v47, %v723_v44 }
 0x3c0   :  { %v2315_v58 = vsel %vm61_vm3, %v727_v6, 0.0 }
 0x3c1   :  { %v735_v11 = vmul.f32 %v2315_v58, %v2315_v58 }
 0x3c3   :  { %742 = vadd.xlane.f32.xlu2 %v735_v11 }
 0x41e   :  { %v737_v15 = vpop.xlane.xlu2 %736 }
 0x41f   :  { %v744_v5 = vmul.f32 0.010416667, %v737_v15 }
 0x421   :  { %v748_v37 = vadd.f32 1e-05, %v744_v5 }
 0x423   :  { %1789 = vrsqrt.f32 %v748_v37  ;;  %vm758_vm9 = vweird.f32 %v748_v37 }
 0x427   :  { %v739_v31 = vpop.xlane.xlu0 %738 }
 0x428   :  { %v745_v21 = vmul.f32 0.010416667, %v739_v31  ;;  %v1754_v31 = vld [vmem:[#allocation5 + $0x2] ss:$0 sm:$0xff] }
 0x429   :  { %v1790_v24 = vpop.eup %1789 }
 0x42a   :  { %v753_v25 = vmul.f32 %v1790_v24, %v748_v37  ;;  %v749_v26 = vadd.f32 1e-05, %v745_v21  ;;  %vm759_vm8 = vweird.f32 %v1790_v24 }
 0x42b   :  { %vm760_vm10 = vmor %vm758_vm9, %vm759_vm8 }
 0x42c   :  { %v754_v48 = vmul.f32 %v1790_v24, %v753_v25  ;;  %1791 = vrsqrt.f32 %v749_v26  ;;  %vm768_vm12 = vweird.f32 %v749_v26 }
 0x42e   :  { %v755_v27 = vmul.f32 0.5, %v754_v48 }
 0x42f   :  { %v741_v29 = vpop.xlane.xlu1 %740 }
 0x430   :  { %v756_v28 = vsub.f32 1.5, %v755_v27  ;;  %v746_v30 = vmul.f32 0.010416667, %v741_v29 }
 0x432   :  { %v1792_v19 = vpop.eup %1791  ;;  %v757_v36 = vmul.f32 %v1790_v24, %v756_v28  ;;  %v750_v17 = vadd.f32 1e-05, %v746_v30 }
 0x433   :  { %v763_v35 = vmul.f32 %v1792_v19, %v749_v26  ;;  %vm769_vm11 = vweird.f32 %v1792_v19 }
 0x434   :  { %1793 = vrsqrt.f32 %v750_v17  ;;  %v761_v41 = vsel %vm760_vm10, %v1790_v24, %v757_v36  ;;  %vm770_vm13 = vmor %vm768_vm12, %vm769_vm11  ;;  %vm778_vm7 = vweird.f32 %v750_v17 }
 0x435   :  { %v764_v34 = vmul.f32 %v1792_v19, %v763_v35  ;;  %v792_v4 = vmul.f32 %v761_v41, %v2297_v50 }
 0x436   :  { %v743_v20 = vpop.xlane.xlu2 %742 }
 0x437   :  { %v765_v43 = vmul.f32 0.5, %v764_v34  ;;  %v747_v2 = vmul.f32 0.010416667, %v743_v20  ;;  %v797_v60 = vmul.f32 %v1752_v3, %v792_v4 }
 0x439   :  { %v766_v10 = vsub.f32 1.5, %v765_v43  ;;  %v751_v40 = vadd.f32 1e-05, %v747_v2  ;;  %v802_v52 = vadd.f32 %v1753_v33, %v797_v60 }
 0x43a   :  { %v1794_v9 = vpop.eup %1793 }
 0x43b   :  { %v767_v38 = vmul.f32 %v1792_v19, %v766_v10  ;;  %v773_v53 = vmul.f32 %v1794_v9, %v750_v17  ;;  %1795 = vrsqrt.f32 %v751_v40  ;;  %vm779_vm6 = vweird.f32 %v1794_v9 }
 0x43c   :  { %vm780_vm1 = vmor %vm778_vm7, %vm779_vm6  ;;  %vm788_vm5 = vweird.f32 %v751_v40 }
 0x43d   :  { %v771_v47 = vsel %vm770_vm13, %v1792_v19, %v767_v38  ;;  %v774_v32 = vmul.f32 %v1794_v9, %v773_v53 }
 0x43e   :  { %v793_v49 = vmul.f32 %v771_v47, %v2303_v46 }
 0x43f   :  { %v775_v51 = vmul.f32 0.5, %v774_v32 }
 0x440   :  { %v798_v7 = vmul.f32 %v1752_v3, %v793_v49 }
 0x441   :  { %v1796_v42 = vpop.eup %1795  ;;  %v776_v54 = vsub.f32 1.5, %v775_v51 }
 0x442   :  { %v803_v55 = vadd.f32 %v1753_v33, %v798_v7  ;;  %v783_v50 = vmul.f32 %v1796_v42, %v751_v40  ;;  %vm789_vm4 = vweird.f32 %v1796_v42 }
 0x443   :  { %v777_v57 = vmul.f32 %v1794_v9, %v776_v54  ;;  %vm790_vm8 = vmor %vm788_vm5, %vm789_vm4 }
 0x444   :  { %v807_v62 = vpack.c.bf16 %v803_v55, %v802_v52  ;;  %v784_v63 = vmul.f32 %v1796_v42, %v783_v50 }
 0x445   :  { %v781_v6 = vsel %vm780_vm1, %v1794_v9, %v777_v57 }
 0x446   :  { %883 = vmatmul.bf16.vlgmr.msra.gmra.mxu2 %v807_v62  ;;  %v785_v44 = vmul.f32 0.5, %v784_v63  ;;  %v794_v46 = vmul.f32 %v781_v6, %v2309_v59 }
 0x448   :  { %v786_v11 = vsub.f32 1.5, %v785_v44  ;;  %v799_v8 = vmul.f32 %v1752_v3, %v794_v46 }
 0x44a   :  { %v787_v45 = vmul.f32 %v1796_v42, %v786_v11  ;;  %v804_v15 = vadd.f32 %v1753_v33, %v799_v8 }
 0x44c   :  { %v791_v12 = vsel %vm790_vm8, %v1796_v42, %v787_v45 }
 0x44d   :  { %v795_v13 = vmul.f32 %v791_v12, %v2315_v58 }
 0x44f   :  { %v800_v56 = vmul.f32 %v1752_v3, %v795_v13 }
 0x451   :  { %v805_v16 = vadd.f32 %v1753_v33, %v800_v56 }
 0x453   :  { %v808_v5 = vpack.c.bf16 %v805_v16, %v804_v15 }
 0x456   :  { %888 = vmatmul.bf16.gmra.mxu2 %v808_v5 }
 0x4c9   :  { %v884_v37 = vpop.f32.mrf.mxu2 }
 0x4ca   :  { %v885_v48 = vadd.f32 %v1754_v31, %v884_v37 }
 0x4cc   :  { %v906_v27 = vsel %vm56_vm0, %v885_v48, 0.0 }
 0x4d1   :  { %v886_v61 = vpop.f32.mrf.mxu2 }
 0x4d2   :  { %v887_v59 = vadd.f32 %v1754_v31, %v886_v61 }
 0x4d4   :  { %v1630_v58 = vpack.c.bf16 %v887_v59, %v885_v48  ;;  %v907_v30 = vsel %vm56_vm0, %v887_v59, 0.0 }
 0x4d9   :  { %v889_v18 = vpop.f32.mrf.mxu2 }
 0x4da   :  { %v890_v24 = vadd.f32 %v1754_v31, %v889_v18 }
 0x4dc   :  { %v908_v40 = vsel %vm56_vm0, %v890_v24, 0.0 }
 0x4e1   :  { %v891_v21 = vpop.f32.mrf.mxu2 }
 0x4e2   :  { %v892_v25 = vadd.f32 %v1754_v31, %v891_v21 }
 0x4e4   :  { %v1627_v26 = vpack.c.bf16 %v892_v25, %v890_v24  ;;  %v909_v63 = vsel %vm56_vm0, %v892_v25, 0.0 }
 0x4e6   :  { %1628 = vmatpush.bf16.msk.msra.mxu3 %vm2180_vm14, %v1627_v26 }
 0x4ea   :  { %1631 = vmatpush.bf16.msk.msra.mxu3 %vm2180_vm14, %v1630_v58 }
 0x4ee   :  { %1634 = vmatpush.bf16.msk.msra.mxu3 %vm2191_vm15, %v1627_v26 }
 0x4f2   :  { %1637 = vmatpush.bf16.msk.msra.mxu3 %vm2191_vm15, %v1630_v58 }
 0x4f5   :  { %1638 = vmatmul.msk.bf16.vlgmr.msra.gmra.mxu3 %vm75_vm2, %v2199_v39 }
 0x505   :  { %1639 = vmatmul.msk.bf16.gmra.mxu3 %vm75_vm2, %v2207_v23 }
 0x578   :  { %v919_v28 = vpop.f32.mrf.mxu3 }
 0x579   :  { %v2361_v29 = vadd.f32 %v919_v28, %v906_v27 }
 0x57b   :  { %v2364_v14 = vmul.f32 0.70710677, %v2361_v29 }
 0x57d   :  { %v941_v19 = vmul.f32 %v2364_v14, %v2364_v14 }
 0x57f   :  { %v942_v22 = vmin.f32 %v941_v19, 16.0 }
 0x580   :  { %v921_v39 = vpop.f32.mrf.mxu3 }
 0x581   :  { %v943_v35 = vmul.f32 2.1237322e-06, %v942_v22  ;;  %v2370_v36 = vadd.f32 %v921_v39, %v907_v30  ;;  %v954_v23 = vmul.f32 3.8918573e-05, %v942_v22 }
 0x583   :  { %v944_v17 = vadd.f32 0.00028619796, %v943_v35  ;;  %v2373_v34 = vmul.f32 0.70710677, %v2370_v36  ;;  %v955_v43 = vadd.f32 0.001143296, %v954_v23 }
 0x585   :  { %v945_v20 = vmul.f32 %v944_v17, %v942_v22  ;;  %v981_v41 = vmul.f32 %v2373_v34, %v2373_v34  ;;  %v956_v10 = vmul.f32 %v955_v43, %v942_v22 }
 0x587   :  { %v946_v2 = vadd.f32 0.0036580483, %v945_v20  ;;  %v2377_v38 = vmin.f32 %v981_v41, 16.0  ;;  %v957_v3 = vadd.f32 0.014752088, %v956_v10 }
 0x588   :  { %v924_v4 = vpop.f32.mrf.mxu3 }
 0x589   :  { %v983_v9 = vmul.f32 2.1237322e-06, %v2377_v38  ;;  %v2382_v53 = vadd.f32 %v924_v4, %v908_v40  ;;  %v994_v47 = vmul.f32 3.8918573e-05, %v2377_v38  ;;  %v958_v32 = vmul.f32 %v957_v3, %v942_v22 }
 0x58a   :  { %v947_v49 = vmul.f32 %v946_v2, %v942_v22 }
 0x58b   :  { %v984_v60 = vadd.f32 0.00028619796, %v983_v9  ;;  %v2386_v33 = vmul.f32 0.70710677, %v2382_v53  ;;  %v959_v51 = vadd.f32 0.112945676, %v958_v32 }
 0x58c   :  { %v995_v7 = vadd.f32 0.001143296, %v994_v47  ;;  %v948_v50 = vadd.f32 0.05243302, %v947_v49 }
 0x58d   :  { %v985_v42 = vmul.f32 %v984_v60, %v2377_v38  ;;  %v1021_v54 = vmul.f32 %v2386_v33, %v2386_v33  ;;  %v960_v52 = vmul.f32 %v959_v51, %v942_v22 }
 0x58e   :  { %v996_v55 = vmul.f32 %v995_v7, %v2377_v38  ;;  %v949_v56 = vmul.f32 %v948_v50, %v942_v22 }
 0x58f   :  { %v986_v57 = vadd.f32 0.0036580483, %v985_v42  ;;  %v2392_v62 = vmin.f32 %v1021_v54, 16.0  ;;  %v961_v6 = vadd.f32 0.4994258, %v960_v52 }
 0x590   :  { %v926_v44 = vpop.f32.mrf.mxu3  ;;  %v997_v11 = vadd.f32 0.014752088, %v996_v55  ;;  %v950_v24 = vadd.f32 0.18741608, %v949_v56 }
 0x591   :  { %v2396_v46 = vadd.f32 %v926_v44, %v909_v63  ;;  %v1023_v45 = vmul.f32 2.1237322e-06, %v2392_v62  ;;  %v962_v12 = vmul.f32 %v961_v6, %v942_v22  ;;  %v1034_v8 = vmul.f32 3.8918573e-05, %v2392_v62 }
 0x592   :  { %v998_v13 = vmul.f32 %v997_v11, %v2377_v38  ;;  %v987_v15 = vmul.f32 %v986_v57, %v2377_v38  ;;  %v951_v39 = vmul.f32 %v950_v24, %v942_v22 }
 0x593   :  { %v1024_v16 = vadd.f32 0.00028619796, %v1023_v45  ;;  %v2403_v5 = vmul.f32 0.70710677, %v2396_v46  ;;  %v963_v37 = vadd.f32 1.0, %v962_v12 }
 0x594   :  { %v999_v61 = vadd.f32 0.112945676, %v998_v13  ;;  %v1035_v18 = vadd.f32 0.001143296, %v1034_v8  ;;  %v988_v59 = vadd.f32 0.05243302, %v987_v15 }
 0x595   :  { %v1025_v31 = vmul.f32 %v1024_v16, %v2392_v62  ;;  %v1061_v21 = vmul.f32 %v2403_v5, %v2403_v5  ;;  %1797 = vrcp.f32 %v963_v37  ;;  %v952_v22 = vadd.f32 1.1283791, %v951_v39 }
 0x596   :  { %v1000_v25 = vmul.f32 %v999_v61, %v2377_v38  ;;  %v1036_v48 = vmul.f32 %v1035_v18, %v2392_v62  ;;  %v989_v17 = vmul.f32 %v988_v59, %v2377_v38  ;;  %v975_v49 = vand.u32 2147483648, %v963_v37 }
 0x597   :  { %v2409_v26 = vmin.f32 %v1061_v21, 16.0  ;;  %v1026_v58 = vadd.f32 0.0036580483, %v1025_v31  ;;  %v973_v7 = vand.u32 2147483647, %v963_v37  ;;  %vm969_vm14 = vweird.f32 %v963_v37 }
 0x598   :  { %v1001_v27 = vadd.f32 0.4994258, %v1000_v25  ;;  %v1037_v19 = vadd.f32 0.014752088, %v1036_v48  ;;  %v990_v32 = vadd.f32 0.18741608, %v989_v17  ;;  %v953_v63 = vmul.f32 %v952_v22, %v2364_v14 }
 0x599   :  { %v1063_v28 = vmul.f32 2.1237322e-06, %v2409_v26  ;;  %v1074_v30 = vmul.f32 3.8918573e-05, %v2409_v26  ;;  %v1027_v40 = vmul.f32 %v1026_v58, %v2392_v62  ;;  %v976_v44 = vor.u32 1.1754944e-38, %v975_v49 }
 0x59a   :  { %v1002_v35 = vmul.f32 %v1001_v27, %v2377_v38  ;;  %v1038_v20 = vmul.f32 %v1037_v19, %v2392_v62  ;;  %v991_v45 = vmul.f32 %v990_v32, %v2377_v38  ;;  %vm974_vm9 = vcmp.eq.f32.partialorder %v973_v7, 8.507059e+37 }
 0x59b   :  { %v1798_v23 = vpop.eup %1797  ;;  %v1064_v43 = vadd.f32 0.00028619796, %v1063_v28  ;;  %v1075_v41 = vadd.f32 0.001143296, %v1074_v30  ;;  %v1028_v54 = vadd.f32 0.05243302, %v1027_v40 }
 0x59c   :  { %v965_v10 = vmul.f32 %v1798_v23, %v963_v37  ;;  %v1003_v2 = vadd.f32 1.0, %v1002_v35  ;;  %v1039_v4 = vadd.f32 0.112945676, %v1038_v20  ;;  %vm970_vm2 = vweird.f32 %v1798_v23 }
 0x59d   :  { %v1076_v3 = vmul.f32 %v1075_v41, %v2409_v26  ;;  %v1065_v9 = vmul.f32 %v1064_v43, %v2409_v26  ;;  %vm971_vm15 = vmor %vm969_vm14, %vm970_vm2  ;;  %v1029_v8 = vmul.f32 %v1028_v54, %v2392_v62  ;;  %v992_v31 = vadd.f32 1.1283791, %v991_v45 }
 0x59e   :  { %v966_v47 = vsub.f32 1.0, %v965_v10  ;;  %1799 = vrcp.f32 %v1003_v2  ;;  %v1040_v60 = vmul.f32 %v1039_v4, %v2392_v62  ;;  %v1015_v24 = vand.u32 2147483648, %v1003_v2 }
 0x59f   :  { %v1077_v42 = vadd.f32 0.014752088, %v1076_v3  ;;  %v1066_v55 = vadd.f32 0.0036580483, %v1065_v9  ;;  %v1013_v38 = vand.u32 2147483647, %v1003_v2  ;;  %vm1009_vm11 = vweird.f32 %v1003_v2 }
 0x5a0   :  { %v967_v51 = vmul.f32 %v1798_v23, %v966_v47  ;;  %v1041_v52 = vadd.f32 0.4994258, %v1040_v60  ;;  %v933_v48 = vmul.f32 0.5, %v2361_v29  ;;  %v1030_v58 = vadd.f32 0.18741608, %v1029_v8 }
 0x5a1   :  { %v1078_v57 = vmul.f32 %v1077_v42, %v2409_v26  ;;  %v1067_v16 = vmul.f32 %v1066_v55, %v2409_v26  ;;  %v1016_v35 = vor.u32 1.1754944e-38, %v1015_v24  ;;  %vm1014_vm13 = vcmp.eq.f32.partialorder %v1013_v38, 8.507059e+37 }
 0x5a2   :  { %v968_v50 = vadd.f32 %v1798_v23, %v967_v51  ;;  %v1042_v6 = vmul.f32 %v1041_v52, %v2392_v62  ;;  %v1031_v41 = vmul.f32 %v1030_v58, %v2392_v62  ;;  %v934_v9 = vmul.f32 0.5, %v2370_v36 }
 0x5a3   :  { %v1079_v13 = vadd.f32 0.112945676, %v1078_v57  ;;  %v1068_v27 = vadd.f32 0.05243302, %v1067_v16 }
 0x5a4   :  { %v1800_v11 = vpop.eup %1799  ;;  %v972_v12 = vsel %vm971_vm15, %v1798_v23, %v968_v50  ;;  %v1043_v61 = vadd.f32 1.0, %v1042_v6  ;;  %v993_v23 = vmul.f32 %v992_v31, %v2373_v34  ;;  %v1032_v47 = vadd.f32 1.1283791, %v1031_v41 }
 0x5a5   :  { %v977_v56 = vsel %vm974_vm9, %v976_v44, %v972_v12  ;;  %v1005_v15 = vmul.f32 %v1800_v11, %v1003_v2  ;;  %v1080_v14 = vmul.f32 %v1079_v13, %v2409_v26  ;;  %vm1010_vm10 = vweird.f32 %v1800_v11 }
 0x5a6   :  { %v978_v37 = vmul.f32 %v977_v56, %v953_v63  ;;  %1801 = vrcp.f32 %v1043_v61  ;;  %vm1011_vm12 = vmor %vm1009_vm11, %vm1010_vm10  ;;  %v1069_v29 = vmul.f32 %v1068_v27, %v2409_v26  ;;  %v1055_v22 = vand.u32 2147483648, %v1043_v61 }
 0x5a7   :  { %v1006_v18 = vsub.f32 1.0, %v1005_v15  ;;  %v1081_v59 = vadd.f32 0.4994258, %v1080_v14  ;;  %v1053_v60 = vand.u32 2147483647, %v1043_v61  ;;  %vm1049_vm7 = vweird.f32 %v1043_v61 }
 0x5a8   :  { %v1640_v21 = vclamps-f32 %v978_v37, 1.0  ;;  %v1070_v34 = vadd.f32 0.18741608, %v1069_v29  ;;  %v1056_v54 = vor.u32 1.1754944e-38, %v1055_v22  ;;  %v1033_v55 = vmul.f32 %v1032_v47, %v2386_v33 }
 0x5a9   :  { %v1007_v25 = vmul.f32 %v1800_v11, %v1006_v18  ;;  %v1082_v30 = vmul.f32 %v1081_v59, %v2409_v26  ;;  %vm1054_vm4 = vcmp.eq.f32.partialorder %v1053_v60, 8.507059e+37  ;;  %v936_v18 = vmul.f32 0.5, %v2396_v46 }
 0x5aa   :  { %v1101_v28 = vadd.f32 1.0, %v1640_v21  ;;  %v1071_v42 = vmul.f32 %v1070_v34, %v2409_v26  ;;  %v935_v26 = vmul.f32 0.5, %v2382_v53 }
 0x5ab   :  { %v1008_v19 = vadd.f32 %v1800_v11, %v1007_v25  ;;  %v1083_v43 = vadd.f32 1.0, %v1082_v30 }
 0x5ac   :  { %v2430_v39 = vmul.f32 %v1101_v28, %v933_v48  ;;  %v1802_v20 = vpop.eup %1801  ;;  %v1072_v6 = vadd.f32 1.1283791, %v1071_v42 }
 0x5ad   :  { %v1012_v17 = vsel %vm1011_vm12, %v1800_v11, %v1008_v19  ;;  %v1045_v40 = vmul.f32 %v1802_v20, %v1043_v61  ;;  %1803 = vrcp.f32 %v1083_v43  ;;  %vm1050_vm6 = vweird.f32 %v1802_v20 }
 0x5ae   :  { %1111 = vadd.xlane.f32.xlu0 %v2430_v39  ;;  %v1017_v10 = vsel %vm1014_vm13, %v1016_v35, %v1012_v17  ;;  %vm1051_vm1 = vmor %vm1049_vm7, %vm1050_vm6  ;;  %v1095_v44 = vand.u32 2147483648, %v1083_v43  ;;  %v1093_v45 = vand.u32 2147483647, %v1083_v43  ;;  %vm1089_vm8 = vweird.f32 %v1083_v43 }
 0x5af   :  { %v1018_v2 = vmul.f32 %v1017_v10, %v993_v23  ;;  %v1046_v3 = vsub.f32 1.0, %v1045_v40  ;;  %v1073_v33 = vmul.f32 %v1072_v6, %v2403_v5 }
 0x5b0   :  { %v1096_v56 = vor.u32 1.1754944e-38, %v1095_v44  ;;  %vm1094_vm14 = vcmp.eq.f32.partialorder %v1093_v45, 8.507059e+37 }
 0x5b1   :  { %v1641_v4 = vclamps-f32 %v1018_v2, 1.0  ;;  %v1047_v49 = vmul.f32 %v1802_v20, %v1046_v3 }
 0x5b3   :  { %v1102_v32 = vadd.f32 1.0, %v1641_v4  ;;  %v1804_v62 = vpop.eup %1803  ;;  %v1048_v7 = vadd.f32 %v1802_v20, %v1047_v49 }
 0x5b4   :  { %v1085_v52 = vmul.f32 %v1804_v62, %v1083_v43  ;;  %vm1090_vm5 = vweird.f32 %v1804_v62 }
 0x5b5   :  { %v1106_v51 = vmul.f32 %v1102_v32, %v934_v9  ;;  %v1052_v36 = vsel %vm1051_vm1, %v1802_v20, %v1048_v7  ;;  %vm1091_vm2 = vmor %vm1089_vm8, %vm1090_vm5  ;;  %v1731_v9 = vld [vmem:[%s2515_s2 + $0x38] sm:$0xff]  ;;  %v1730_v32 = vld [vmem:[%s2515_s2 + $0x30] sm:$0xff] }
 0x5b6   :  { %v1057_v50 = vsel %vm1054_vm4, %v1056_v54, %v1052_v36  ;;  %v1086_v57 = vsub.f32 1.0, %v1085_v52  ;;  %1301 = vmatpush.bf16.msrb.mxu1 %v1731_v9  ;;  %v1728_v36 = vld [vmem:[%s2515_s2 + $0x20] sm:$0xff] }
 0x5b7   :  { %1113 = vadd.xlane.f32.xlu1 %v1106_v51  ;;  %v1058_v63 = vmul.f32 %v1057_v50, %v1033_v55 }
 0x5b8   :  { %v1087_v11 = vmul.f32 %v1804_v62, %v1086_v57 }
 0x5b9   :  { %v1642_v12 = vclamps-f32 %v1058_v63, 1.0  ;;  %v1727_v63 = vld [vmem:[%s2515_s2 + $0x18] sm:$0xff] }
 0x5ba   :  { %v1088_v13 = vadd.f32 %v1804_v62, %v1087_v11  ;;  %1302 = vmatpush.bf16.msrb.mxu1 %v1730_v32 }
 0x5bb   :  { %v1103_v8 = vadd.f32 1.0, %v1642_v12 }
 0x5bc   :  { %v1092_v15 = vsel %vm1091_vm2, %v1804_v62, %v1088_v13  ;;  %v1729_v62 = vld [vmem:[%s2515_s2 + $0x28] sm:$0xff] }
 0x5bd   :  { %v1107_v16 = vmul.f32 %v1103_v8, %v935_v26  ;;  %v1097_v37 = vsel %vm1094_vm14, %v1096_v56, %v1092_v15  ;;  %v1726_v26 = vld [vmem:[%s2515_s2 + $0x10] sm:$0xff]  ;;  %v1755_v56 = vld [vmem:[#allocation5 + $0x5] ss:$0 sm:$0xff]  ;;  %vm1317_vm14 = vcmask 1041408  }
 0x5be   :  { %v1098_v61 = vmul.f32 %v1097_v37, %v1073_v33  ;;  %1303 = vmatpush.bf16.msrb.mxu1 %v1729_v62 }
 0x5bf   :  { %1115 = vadd.xlane.f32.xlu2 %v1107_v16 }
 0x5c0   :  { %v1643_v14 = vclamps-f32 %v1098_v61, 1.0 }
 0x5c2   :  { %v1104_v31 = vadd.f32 1.0, %v1643_v14  ;;  %1304 = vmatpush.bf16.msrb.mxu1 %v1728_v36  ;;  %v1725_v14 = vld [vmem:[%s2515_s2 + $0x8] sm:$0xff] }
 0x5c4   :  { %v1108_v21 = vmul.f32 %v1104_v31, %v936_v18  ;;  %v1756_v31 = vld [vmem:[#allocation5 + $0x8] ss:$0 sm:$0xff] }
 0x5c6   :  { %1117 = vadd.xlane.f32.xlu0 %v1108_v21  ;;  %1305 = vmatpush.bf16.msrb.mxu1 %v1727_v63 }
 0x5ca   :  { %1306 = vmatpush.bf16.msrb.mxu1 %v1726_v26 }
 0x5ce   :  { %1307 = vmatpush.bf16.msrb.mxu1 %v1725_v14  ;;  %v1738_v14 = vld [vmem:[#allocation2 + $0x30] sm:$0xff] }
 0x621   :  { %v1112_v24 = vpop.xlane.xlu0 %1111 }
 0x622   :  { %v1119_v25 = vmul.f32 0.010416667, %v1112_v24 }
 0x624   :  { %v1123_v53 = vsub.f32 %v2430_v39, %v1119_v25 }
 0x626   :  { %v2445_v38 = vsel %vm61_vm3, %v1123_v53, 0.0 }
 0x627   :  { %v1131_v5 = vmul.f32 %v2445_v38, %v2445_v38 }
 0x629   :  { %1135 = vadd.xlane.f32.xlu1 %v1131_v5 }
 0x62a   :  { %v1114_v59 = vpop.xlane.xlu1 %1113 }
 0x62b   :  { %v1120_v48 = vmul.f32 0.010416667, %v1114_v59 }
 0x62d   :  { %v1124_v58 = vsub.f32 %v1106_v51, %v1120_v48 }
 0x62f   :  { %v2451_v46 = vsel %vm61_vm3, %v1124_v58, 0.0 }
 0x630   :  { %v1132_v27 = vmul.f32 %v2451_v46, %v2451_v46 }
 0x632   :  { %1137 = vadd.xlane.f32.xlu2 %v1132_v27  ;;  %v1116_v28 = vpop.xlane.xlu2 %1115 }
 0x633   :  { %v1121_v19 = vmul.f32 0.010416667, %v1116_v28  ;;  %v1907_v28 = vmov 16.0  }
 0x635   :  { %v1125_v30 = vsub.f32 %v1107_v16, %v1121_v19 }
 0x637   :  { %v2457_v39 = vsel %vm61_vm3, %v1125_v30, 0.0 }
 0x638   :  { %v1133_v35 = vmul.f32 %v2457_v39, %v2457_v39 }
 0x639   :  { %v1118_v23 = vpop.xlane.xlu0 %1117 }
 0x63a   :  { %v1122_v17 = vmul.f32 0.010416667, %v1118_v23  ;;  %1139 = vadd.xlane.f32.xlu0 %v1133_v35 }
 0x63c   :  { %v1126_v43 = vsub.f32 %v1108_v21, %v1122_v17 }
 0x63e   :  { %v2463_v20 = vsel %vm61_vm3, %v1126_v43, 0.0 }
 0x63f   :  { %v1134_v41 = vmul.f32 %v2463_v20, %v2463_v20 }
 0x641   :  { %1141 = vadd.xlane.f32.xlu1 %v1134_v41 }
 0x69c   :  { %v1136_v29 = vpop.xlane.xlu1 %1135 }
 0x69d   :  { %v1143_v10 = vmul.f32 0.010416667, %v1136_v29 }
 0x69f   :  { %v1147_v2 = vadd.f32 1e-05, %v1143_v10 }
 0x6a1   :  { %1805 = vrsqrt.f32 %v1147_v2  ;;  %vm1157_vm15 = vweird.f32 %v1147_v2 }
 0x6a5   :  { %v1138_v40 = vpop.xlane.xlu2 %1137 }
 0x6a6   :  { %v1144_v4 = vmul.f32 0.010416667, %v1138_v40 }
 0x6a7   :  { %v1806_v3 = vpop.eup %1805 }
 0x6a8   :  { %v1152_v47 = vmul.f32 %v1806_v3, %v1147_v2  ;;  %v1148_v34 = vadd.f32 1e-05, %v1144_v4  ;;  %vm1158_vm3 = vweird.f32 %v1806_v3 }
 0x6a9   :  { %vm1159_vm9 = vmor %vm1157_vm15, %vm1158_vm3 }
 0x6aa   :  { %v1153_v22 = vmul.f32 %v1806_v3, %v1152_v47  ;;  %1807 = vrsqrt.f32 %v1148_v34  ;;  %vm1167_vm11 = vweird.f32 %v1148_v34 }
 0x6ac   :  { %v1154_v49 = vmul.f32 0.5, %v1153_v22 }
 0x6ad   :  { %v1140_v60 = vpop.xlane.xlu0 %1139 }
 0x6ae   :  { %v1155_v7 = vsub.f32 1.5, %v1154_v49  ;;  %v1145_v42 = vmul.f32 0.010416667, %v1140_v60 }
 0x6b0   :  { %v1808_v51 = vpop.eup %1807  ;;  %v1149_v52 = vadd.f32 1e-05, %v1145_v42  ;;  %v1156_v50 = vmul.f32 %v1806_v3, %v1155_v7 }
 0x6b1   :  { %v1162_v54 = vmul.f32 %v1808_v51, %v1148_v34  ;;  %vm1168_vm10 = vweird.f32 %v1808_v51 }
 0x6b2   :  { %1809 = vrsqrt.f32 %v1149_v52  ;;  %v1160_v45 = vsel %vm1159_vm9, %v1806_v3, %v1156_v50  ;;  %vm1169_vm12 = vmor %vm1167_vm11, %vm1168_vm10  ;;  %vm1177_vm6 = vweird.f32 %v1149_v52  ;;  %vm1462_vm10 = vcmask 1040384  }
 0x6b3   :  { %v1163_v55 = vmul.f32 %v1808_v51, %v1162_v54  ;;  %v1191_v33 = vmul.f32 %v1160_v45, %v2445_v38  ;;  %v1724_v38 = vld [vmem:[%s2515_s2] sm:$0xff]  ;;  %s1908_s2 = smov [#allocation7]  }
 0x6b4   :  { %v1142_v44 = vpop.xlane.xlu1 %1141  ;;  %1308 = vmatpush.bf16.msrb.mxu1 %v1724_v38  ;;  %s1511_s6 = sshll.u32 %s1908_s2, 4  ;;  %s1512_s6 = int_to_ptr.vmem [resolvable:$true] %s1511_s6 }
 0x6b5   :  { %v1164_v57 = vmul.f32 0.5, %v1163_v55  ;;  %v1146_v11 = vmul.f32 0.010416667, %v1142_v44  ;;  %v1196_v21 = vmul.f32 %v1755_v56, %v1191_v33 }
 0x6b7   :  { %v1165_v6 = vsub.f32 1.5, %v1164_v57  ;;  %v1150_v13 = vadd.f32 1e-05, %v1146_v11  ;;  %v1201_v48 = vadd.f32 %v1756_v31, %v1196_v21  ;;  %v1757_v11 = vld [vmem:[#allocation5 + $0x9] ss:$0 sm:$0xff]  ;;  %v1735_v21 = vld [vmem:[#allocation2 + $0x18] sm:$0xff] }
 0x6b8   :  { %v1810_v8 = vpop.eup %1809 }
 0x6b9   :  { %v1166_v12 = vmul.f32 %v1808_v51, %v1165_v6  ;;  %v1172_v16 = vmul.f32 %v1810_v8, %v1149_v52  ;;  %1811 = vrsqrt.f32 %v1150_v13  ;;  %vm1178_vm13 = vweird.f32 %v1810_v8 }
 0x6ba   :  { %vm1179_vm7 = vmor %vm1177_vm6, %vm1178_vm13  ;;  %1813 = vrcp.f32 %v1907_v28  ;;  %vm1187_vm4 = vweird.f32 %v1150_v13  ;;  %v1229_v52 = vshrl.u32 %v54_v0, 7  ;;  %v1739_v0 = vld [vmem:[#allocation2 + $0x38] sm:$0xff]  ;;  %vm1466_vm13 = vcmask 1041409  }
 0x6bb   :  { %v1170_v15 = vsel %vm1169_vm12, %v1808_v51, %v1166_v12  ;;  %v1173_v61 = vmul.f32 %v1810_v8, %v1172_v16  ;;  %1412 = vmatpush.bf16.msrb.mxu3 %v1739_v0  ;;  %vm1474_vm6 = vcmp.eq.s32.totalorder %v1946_v1, 0 }
 0x6bc   :  { %v1192_v37 = vmul.f32 %v1170_v15, %v2451_v46  ;;  %vm1230_vm2 = vcmp.eq.s32.totalorder %v1229_v52, 0 }
 0x6bd   :  { %v1174_v24 = vmul.f32 0.5, %v1173_v61 }
 0x6be   :  { %v1197_v18 = vmul.f32 %v1755_v56, %v1192_v37 }
 0x6bf   :  { %v1812_v25 = vpop.eup %1811  ;;  %v1175_v5 = vsub.f32 1.5, %v1174_v24  ;;  %1413 = vmatpush.bf16.msrb.mxu3 %v1738_v14  ;;  %v1734_v24 = vld [vmem:[#allocation2 + $0x10] sm:$0xff] }
 0x6c0   :  { %v1202_v53 = vadd.f32 %v1756_v31, %v1197_v18  ;;  %v1182_v59 = vmul.f32 %v1812_v25, %v1150_v13  ;;  %vm1188_vm1 = vweird.f32 %v1812_v25  ;;  %v1814_v41 = vpop.eup %1813  ;;  %v1737_v18 = vld [vmem:[#allocation2 + $0x28] sm:$0xff] }
 0x6c1   :  { %v1176_v58 = vmul.f32 %v1810_v8, %v1175_v5  ;;  %vm1189_vm5 = vmor %vm1187_vm4, %vm1188_vm1  ;;  %v1213_v4 = vmul.f32 16.0, %v1814_v41  ;;  %vm1217_vm8 = vweird.f32 %v1814_v41 }
 0x6c2   :  { %v1183_v46 = vmul.f32 %v1812_v25, %v1182_v59  ;;  %v1205_v27 = vadd.f32 %v1202_v53, %v1201_v48  ;;  %v1732_v53 = vld [vmem:[#allocation2] sm:$0xff] }
 0x6c3   :  { %v1180_v19 = vsel %vm1179_vm7, %v1810_v8, %v1176_v58  ;;  %v1214_v22 = vsub.f32 1.0, %v1213_v4  ;;  %1414 = vmatpush.bf16.msrb.mxu3 %v1737_v18  ;;  %vm1480_vm7 = vcmask 8192  }
 0x6c4   :  { %v1184_v30 = vmul.f32 0.5, %v1183_v46  ;;  %v1193_v23 = vmul.f32 %v1180_v19, %v2457_v39  ;;  %v1206_v17 = vrot.slane %v1205_v27, 4 }
 0x6c5   :  { %v1215_v39 = vmul.f32 %v1814_v41, %v1214_v22 }
 0x6c6   :  { %v1185_v35 = vsub.f32 1.5, %v1184_v30  ;;  %v1198_v10 = vmul.f32 %v1755_v56, %v1193_v23  ;;  %v1207_v40 = vadd.f32 %v1206_v17, %v1205_v27  ;;  %v1758_v30 = vld [vmem:[#allocation5 + $0xa] ss:$0 sm:$0xff]  ;;  %v1759_v17 = vld [vmem:[#allocation5 + $0xb] ss:$0 sm:$0xff] }
 0x6c7   :  { %v1216_v42 = vadd.f32 %v1814_v41, %v1215_v39 }
 0x6c8   :  { %v1186_v43 = vmul.f32 %v1812_v25, %v1185_v35  ;;  %v1203_v9 = vadd.f32 %v1756_v31, %v1198_v10  ;;  %v1208_v34 = vrot.slane %v1207_v40, 2  ;;  %v1760_v10 = vld [vmem:[#allocation5 + $0xc] ss:$0 sm:$0xff] }
 0x6c9   :  { %v1218_v36 = vsel %vm1217_vm8, %v1814_v41, %v1216_v42 }
 0x6ca   :  { %v1190_v29 = vsel %vm1189_vm5, %v1812_v25, %v1186_v43  ;;  %v1209_v49 = vadd.f32 %v1208_v34, %v1207_v40  ;;  %v1733_v25 = vld [vmem:[#allocation2 + $0x8] sm:$0xff] }
 0x6cb   :  { %v1194_v2 = vmul.f32 %v1190_v29, %v2463_v20 }
 0x6cc   :  { %v1210_v51 = vrot.slane %v1209_v49, 1 }
 0x6cd   :  { %v1199_v3 = vmul.f32 %v1755_v56, %v1194_v2 }
 0x6ce   :  { %v1211_v20 = vadd.f32 %v1210_v51, %v1209_v49  ;;  %v1470_v51 = vld [vmem:[#allocation5 + $0x11] sm:$0x1] }
 0x6cf   :  { %v1204_v47 = vadd.f32 %v1756_v31, %v1199_v3  ;;  %v1736_v31 = vld [vmem:[#allocation2 + $0x20] sm:$0xff]  ;;  %v1471_v42 = vsel %vm1462_vm10, %v1470_v51, 0.0 }
 0x6d0   :  { %v1219_v57 = vmul.f32 %v1218_v36, %v1211_v20  ;;  %1415 = vmatpush.bf16.msrb.mxu3 %v1736_v31 }
 0x6d1   :  { %v1220_v32 = vadd.f32 %v1204_v47, %v1203_v9 }
 0x6d3   :  { %v1221_v60 = vrot.slane %v1220_v32, 4 }
 0x6d4   :  { %1416 = vmatpush.bf16.msrb.mxu3 %v1735_v21 }
 0x6d5   :  { %v1222_v62 = vadd.f32 %v1221_v60, %v1220_v32 }
 0x6d7   :  { %v1223_v7 = vrot.slane %v1222_v62, 2 }
 0x6d8   :  { %1417 = vmatpush.bf16.msrb.mxu3 %v1734_v24 }
 0x6d9   :  { %v1224_v54 = vadd.f32 %v1223_v7, %v1222_v62 }
 0x6db   :  { %v1225_v55 = vrot.slane %v1224_v54, 1 }
 0x6dc   :  { %1418 = vmatpush.bf16.msrb.mxu3 %v1733_v25 }
 0x6dd   :  { %v1226_v50 = vadd.f32 %v1225_v55, %v1224_v54 }
 0x6df   :  { %v1227_v63 = vmul.f32 %v1226_v50, %v1218_v36 }
 0x6e0   :  { %1419 = vmatpush.bf16.msrb.mxu3 %v1732_v53 }
 0x6e1   :  { %v1233_v44 = vsel %vm1230_vm2, %v1219_v57, %v1227_v63  ;;  %v1761_v57 = vld [vmem:[#allocation5 + $0xd] ss:$0 sm:$0xff] }
 0x6e2   :  { %v1234_v6 = vpack.c.bf16 %v1233_v44, %v1233_v44 }
 0x6e4   :  { %1309 = vmatmul.bf16.vlgmr.msrb.gmra.mxu1 %v1234_v6  ;;  %v1762_v6 = vld [vmem:[#allocation5 + $0xe] ss:$0 sm:$0xff] }
 0x761   :  { %v1310_v45 = vpop.f32.mrf.mxu1 }
 0x762   :  { %v1311_v12 = vadd.f32 %v1757_v11, %v1310_v45  ;;  %v1763_v45 = vld [vmem:[#allocation5 + $0xf] ss:$0 sm:$0xff] }
 0x764   :  { %v1314_v13 = vmax.f32 %v1311_v12, 0.0  ;;  %v1764_v12 = vld [vmem:[#allocation5 + $0x10] ss:$0 sm:$0xff] }
 0x766   :  { %v1318_v26 = vsel %vm1317_vm14, %v1314_v13, 0.0 }
 0x767   :  { %1319 = vadd.xlane.f32.xlu2 %v1318_v26 }
 0x769   :  { %v1312_v8 = vpop.f32.mrf.mxu1 }
 0x7da   :  { %v1320_v56 = vpop.xlane.xlu2 %1319 }
 0x7db   :  { %v1321_v33 = vmul.f32 0.03125, %v1320_v56 }
 0x7dd   :  { %v1322_v15 = vsub.f32 %v1314_v13, %v1321_v33 }
 0x7df   :  { %v1323_v16 = vsel %vm56_vm0, %v1322_v15, 0.0 }
 0x7e0   :  { %v1324_v37 = vmul.f32 %v1323_v16, %v1323_v16 }
 0x7e2   :  { %v1325_v61 = vsel %vm1317_vm14, %v1324_v37, 0.0 }
 0x7e3   :  { %1326 = vadd.xlane.f32.xlu0 %v1325_v61 }
 0x856   :  { %v1327_v5 = vpop.xlane.xlu0 %1326 }
 0x857   :  { %v1328_v38 = vmul.f32 0.03125, %v1327_v5 }
 0x859   :  { %v1329_v59 = vadd.f32 1e-05, %v1328_v38 }
 0x85b   :  { %1815 = vrsqrt.f32 %v1329_v59  ;;  %vm1336_vm15 = vweird.f32 %v1329_v59 }
 0x861   :  { %v1816_v48 = vpop.eup %1815 }
 0x862   :  { %v1331_v58 = vmul.f32 %v1816_v48, %v1329_v59  ;;  %vm1337_vm3 = vweird.f32 %v1816_v48 }
 0x863   :  { %vm1338_vm9 = vmor %vm1336_vm15, %vm1337_vm3 }
 0x864   :  { %v1332_v46 = vmul.f32 %v1816_v48, %v1331_v58 }
 0x866   :  { %v1333_v27 = vmul.f32 0.5, %v1332_v46 }
 0x868   :  { %v1334_v28 = vsub.f32 1.5, %v1333_v27 }
 0x86a   :  { %v1335_v19 = vmul.f32 %v1816_v48, %v1334_v28 }
 0x86c   :  { %v1339_v35 = vsel %vm1338_vm9, %v1816_v48, %v1335_v19 }
 0x86d   :  { %v1340_v23 = vmul.f32 %v1339_v35, %v1323_v16 }
 0x86f   :  { %v1342_v43 = vmul.f32 %v1758_v30, %v1340_v23 }
 0x871   :  { %v1344_v41 = vadd.f32 %v1759_v17, %v1342_v43 }
 0x873   :  { %v1345_v29 = vpack.c.bf16 %v1344_v41, %v1344_v41  ;;  %v1460_v8 = vmul.f32 %v1764_v12, %v1344_v41 }
 0x875   :  { %1420 = vmatmul.bf16.vlgmr.msrb.gmra.mxu3 %v1345_v29 }
 0x8f8   :  { %v1421_v2 = vpop.f32.mrf.mxu3 }
 0x8f9   :  { %v1422_v40 = vadd.f32 %v1760_v10, %v1421_v2 }
 0x8fb   :  { %v1425_v4 = vmax.f32 %v1422_v40, 0.0 }
 0x8fd   :  { %v1428_v3 = vsel %vm1317_vm14, %v1425_v4, 0.0 }
 0x8fe   :  { %1429 = vadd.xlane.f32.xlu1 %v1428_v3 }
 0x900   :  { %v1423_v9 = vpop.f32.mrf.mxu3 }
 0x971   :  { %v1430_v47 = vpop.xlane.xlu1 %1429 }
 0x972   :  { %v1431_v34 = vmul.f32 0.03125, %v1430_v47 }
 0x974   :  { %v1432_v22 = vsub.f32 %v1425_v4, %v1431_v34 }
 0x976   :  { %v1433_v32 = vsel %vm56_vm0, %v1432_v22, 0.0 }
 0x977   :  { %v1434_v49 = vmul.f32 %v1433_v32, %v1433_v32 }
 0x979   :  { %v1435_v60 = vsel %vm1317_vm14, %v1434_v49, 0.0 }
 0x97a   :  { %1436 = vadd.xlane.f32.xlu2 %v1435_v60 }
 0x982   :  { %1472 = vadd.xlane.f32.xlu2 %v1471_v42 }
 0x9ed   :  { %v1437_v39 = vpop.xlane.xlu2 %1436 }
 0x9ee   :  { %v1438_v62 = vmul.f32 0.03125, %v1437_v39 }
 0x9f0   :  { %v1439_v7 = vadd.f32 1e-05, %v1438_v62 }
 0x9f2   :  { %1817 = vrsqrt.f32 %v1439_v7  ;;  %vm1446_vm0 = vweird.f32 %v1439_v7 }
 0x9f5   :  { %v1473_v37 = vpop.xlane.xlu2 %1472 }
 0x9f8   :  { %v1818_v54 = vpop.eup %1817 }
 0x9f9   :  { %v1441_v52 = vmul.f32 %v1818_v54, %v1439_v7  ;;  %vm1447_vm11 = vweird.f32 %v1818_v54 }
 0x9fa   :  { %vm1448_vm12 = vmor %vm1446_vm0, %vm1447_vm11 }
 0x9fb   :  { %v1442_v20 = vmul.f32 %v1818_v54, %v1441_v52 }
 0x9fd   :  { %v1443_v55 = vmul.f32 0.5, %v1442_v20 }
 0x9ff   :  { %v1444_v36 = vsub.f32 1.5, %v1443_v55 }
 0xa01   :  { %v1445_v50 = vmul.f32 %v1818_v54, %v1444_v36 }
 0xa03   :  { %v1449_v63 = vsel %vm1448_vm12, %v1818_v54, %v1445_v50 }
 0xa04   :  { %v1450_v44 = vmul.f32 %v1449_v63, %v1433_v32 }
 0xa06   :  { %v1452_v11 = vmul.f32 %v1761_v57, %v1450_v44 }
 0xa08   :  { %v1454_v13 = vadd.f32 %v1762_v6, %v1452_v11 }
 0xa0a   :  { %v1457_v26 = vmul.f32 %v1763_v45, %v1454_v13 }
 0xa0c   :  { %v1461_v0 = vadd.f32 %v1460_v8, %v1457_v26 }
 0xa0e   :  { %v1467_v56 = vsel %vm1466_vm13, %v1461_v0, 0.0  ;;  %v1463_v33 = vsel %vm1462_vm10, %v1461_v0, 0.0 }
 0xa0f   :  { %1468 = vadd.xlane.f32.xlu0 %v1467_v56  ;;  %1464 = vadd.xlane.f32.xlu1 %v1463_v33 }
 0xa82   :  { %v1469_v15 = vpop.xlane.xlu0 %1468  ;;  %v1465_v61 = vpop.xlane.xlu1 %1464 }
 0xa83   :  { %v1476_v16 = vrot.slane %v1469_v15, 1 }
 0xa85   :  { %v1478_v14 = vsel %vm1474_vm6, %v1465_v61, %v1476_v16 }
 0xa86   :  { %v1479_v18 = vadd.f32 %v1478_v14, %v1473_v37 }
 0xa88   :  { %v1481_v31 = vsel %vm1480_vm7, %v1479_v18, -inf }
 0xa89   :  { %1482 = vmax.xlane.f32.xlu0 %v1481_v31 }
 0xafc   :  { %v1483_v21 = vpop.xlane.xlu0 %1482 }
 0xafd   :  { %v1484_v24 = vsub.f32 %v1479_v18, %v1483_v21 }
 0xaff   :  { %v1485_v25 = vmul.f32 1.442695, %v1484_v24 }
 0xb01   :  { %1819 = vpow2.f32 %v1485_v25 }
 0xb07   :  { %v1820_v53 = vpop.eup %1819 }
 0xb08   :  { %v1487_v5 = vsel %vm1480_vm7, %v1820_v53, 0.0 }
 0xb09   :  { %1488 = vadd.xlane.f32.xlu1 %v1487_v5 }
 0xb7c   :  { %v1489_v38 = vpop.xlane.xlu1 %1488 }
 0xb7d   :  { %1821 = vrcp.f32 %v1489_v38  ;;  %v1501_v58 = vand.u32 2147483648, %v1489_v38  ;;  %v1499_v27 = vand.u32 2147483647, %v1489_v38  ;;  %vm1495_vm4 = vweird.f32 %v1489_v38 }
 0xb7f   :  { %v1502_v19 = vor.u32 1.1754944e-38, %v1501_v58  ;;  %vm1500_vm8 = vcmp.eq.f32.partialorder %v1499_v27, 8.507059e+37 }
 0xb83   :  { %v1822_v1 = vpop.eup %1821 }
 0xb84   :  { %v1491_v59 = vmul.f32 %v1822_v1, %v1489_v38  ;;  %vm1496_vm1 = vweird.f32 %v1822_v1 }
 0xb85   :  { %vm1497_vm5 = vmor %vm1495_vm4, %vm1496_vm1 }
 0xb86   :  { %v1492_v48 = vsub.f32 1.0, %v1491_v59 }
 0xb88   :  { %v1493_v46 = vmul.f32 %v1822_v1, %v1492_v48 }
 0xb8a   :  { %v1494_v28 = vadd.f32 %v1822_v1, %v1493_v46 }
 0xb8c   :  { %v1498_v30 = vsel %vm1497_vm5, %v1822_v1, %v1494_v28 }
 0xb8d   :  { %v1503_v35 = vsel %vm1500_vm8, %v1502_v19, %v1498_v30 }
 0xb8e   :  { %v1504_v23 = vmul.f32 %v1820_v53, %v1503_v35 }
 0xb90   :  { %1505 = vst.msk [vmem:[#allocation7] sm:$0x1] %vm1480_vm7, %v1504_v23 }
 0xb91   :  { %1516 = dma.vmem_to_hbm [thread:$0]  %s1512_s6, 16, %s1514_s7, [#allocation4]  }
 0xb92   :  { %1899 = dma.done.wait [#allocation4], 16  }
 0xb93   :  { %1900 = vsyncadd [#allocation4], 4294967280 }
 0xb94   :  { %1521 = vsyncpa [#allocation3], 1 }
 0xb95   :  { %1522 = vsyncpa [#allocation6], 1 }
 0xb96   :  { %1523 = vsyncpa [#allocation4], 1 }

</bundles_post_ra>
